<compile_context>
chip_gen: v6e
topology: v6e:2x2x1
jax: 0.10.0
libtpu: 0.0.40
codegen_flags: <defaults>
</compile_context>

<pallas_src>
import functools

import numpy as np
import jax
import jax.numpy as jnp
from jax.experimental import pallas as pl
from jax.experimental.pallas import tpu as pltpu


# ----------------------------------------------------------------------------
# Relative-position index (cached; identical to the PyTorch registered buffer)
# ----------------------------------------------------------------------------
@functools.lru_cache(maxsize=None)
def _relative_position_index(window_size):
    Wh, Ww = window_size
    coords = np.stack(np.meshgrid(np.arange(Wh), np.arange(Ww), indexing="ij"))
    coords_flatten = coords.reshape(2, -1)                                # (2, N)
    rel = coords_flatten[:, :, None] - coords_flatten[:, None, :]         # (2, N, N)
    rel = rel.transpose(1, 2, 0).astype(np.int32)                         # (N, N, 2)
    rel[:, :, 0] += Wh - 1
    rel[:, :, 1] += Ww - 1
    rel[:, :, 0] *= 2 * Ww - 1
    return jnp.asarray(rel.sum(-1))                                       # (N, N) int32


def init_params(key, dim, window_size, num_heads):
    Wh, Ww = window_size
    k1, k2, k3, k4, k5 = jax.random.split(key, 5)
    table_size = (2 * Wh - 1) * (2 * Ww - 1)
    return {
        "rel_bias_table": 0.02 * jax.random.normal(k1, (table_size, num_heads), jnp.float32),
        "w_qkv": 0.05 * jax.random.normal(k2, (dim, 3 * dim), jnp.float32),
        "b_qkv": 0.01 * jax.random.normal(k3, (3 * dim,), jnp.float32),
        "w_proj": 0.05 * jax.random.normal(k4, (dim, dim), jnp.float32),
        "b_proj": 0.01 * jax.random.normal(k5, (dim,), jnp.float32),
    }


# ----------------------------------------------------------------------------
# Pallas kernel: WB windows (= WB*N token rows) per grid step
# ----------------------------------------------------------------------------
def window_attention_kernel(x_ref, wqkv_ref, bqkv_ref, bias_ref, mask_ref,
                            wproj_ref, bproj_ref, o_ref, ctx_ref,
                            *, num_heads, window_block):
    H, WB = num_heads, window_block
    M, C = x_ref.shape                      # M = WB * N token rows in this block
    N = M // WB
    hd = C // H
    cd = x_ref.dtype                        # compute dtype for MXU operands (bf16/f32)

    x = x_ref[...]                                                        # (M, C)

    # --- qkv projection: single lane-dense matmul, f32 accumulation (q*scale folded in).
    qkv = jnp.dot(x, wqkv_ref[...], preferred_element_type=jnp.float32)
    qkv = qkv + bqkv_ref[...]                                             # (M, 3C) f32

    # window-major 3-D views: leading-dim split only (N % 8 == 0 -> whole-tile regroup).
    q3 = qkv[:, :C].reshape(WB, N, C)
    k3 = qkv[:, C:2 * C].reshape(WB, N, C)
    v3 = qkv[:, 2 * C:].reshape(WB, N, C)

    mask = mask_ref[...]                                                  # (1|WB, N, N) f32

    for h in range(H):                                                    # unrolled; H small
        sl = slice(h * hd, (h + 1) * hd)
        qh = q3[..., sl].astype(cd)
        kh = k3[..., sl].astype(cd)
        vh = v3[..., sl].astype(cd)
        # batched over the WB windows of this block
        attn = jnp.einsum("wnd,wmd->wnm", qh, kh,
                          preferred_element_type=jnp.float32)             # (WB, N, N) f32
        attn = attn + bias_ref[h] + mask                                  # rel-pos bias + window mask
        attn = attn - jnp.max(attn, axis=-1, keepdims=True)
        p = jnp.exp(attn)
        p = p * pl.reciprocal(jnp.sum(p, axis=-1, keepdims=True), approx=False)
        ctx_h = jnp.einsum("wnm,wmd->wnd", p.astype(cd), vh,
                           preferred_element_type=jnp.float32)            # (WB, N, hd)
        # assemble heads along the lane axis in an f32 scratch (no (H, M, C) temp)
        ctx_ref[:, h * hd:(h + 1) * hd] = ctx_h.reshape(M, hd)

    # --- output projection: one lane-dense (M, C) @ (C, C) matmul
    y = jnp.dot(ctx_ref[...].astype(cd), wproj_ref[...],
                preferred_element_type=jnp.float32) + bproj_ref[...]
    o_ref[...] = y.astype(o_ref.dtype)


# ----------------------------------------------------------------------------
# Block-size selection (row target + explicit VMEM budget)
# ----------------------------------------------------------------------------
def _choose_window_block(num_windows, tokens, dim, num_heads, n_mask, compute_itemsize,
                         row_target=256, vmem_budget=24 * (1 << 20)):
    wb = max(1, row_target // tokens)
    wb = min(wb, num_windows)

    def step_bytes(w):
        m = w * tokens
        f32 = 4
        inter = m * 3 * dim * f32 + 2 * w * tokens * tokens * f32 + m * dim * f32
        io = 2 * m * dim * compute_itemsize + 2 * m * dim * f32            # double-buffered x/out
        resident = 2 * ((3 * dim * dim + dim * dim) * compute_itemsize
                        + (num_heads + w) * tokens * tokens * f32 + 4 * dim * f32)
        return inter + io + resident

    while wb > 1 and step_bytes(wb) > vmem_budget:
        wb -= 1

    if n_mask > 1:
        if wb >= n_mask:
            wb = (wb // n_mask) * n_mask          # block covers whole mask periods
        else:
            d = 1
            for c in range(1, wb + 1):            # largest divisor of n_mask <= wb
                if n_mask % c == 0:
                    d = c
            wb = d
    return max(1, wb)


# ----------------------------------------------------------------------------
# Wrapper
# ----------------------------------------------------------------------------
def window_attention(x, params, window_size, num_heads, mask=None, qk_scale=None,
                     compute_dtype=jnp.bfloat16):
    """Swin W-MSA forward. compute_dtype=bf16 (default) halves operand DMA bytes and
    doubles MXU rate on v6e/v7x; accumulation, softmax and bias/mask math stay f32."""
    B_, N, C = x.shape
    Wh, Ww = window_size
    assert N == Wh * Ww and C % num_heads == 0
    # TODO(synk): support N % 8 != 0 (e.g. canonical 7x7 windows, N=49) by padding tokens
    # to a multiple of 8 and masking padded keys with a large negative before the softmax.
    assert N % 8 == 0, "Wh*Ww must be a multiple of 8 for the tile-aligned in-kernel reshapes"
    H = num_heads
    hd = C // H
    scale = qk_scale if qk_scale is not None else hd ** (-0.5)

    # ---- one-time parameter prep (plain JAX, outside the kernel) ----
    # qkv weight columns are ordered (3, H, hd): scale the q block, cast MXU operands.
    w_qkv = params["w_qkv"].at[:, :C].multiply(scale).astype(compute_dtype)   # (C, 3C)
    b_qkv = params["b_qkv"].at[:C].multiply(scale).reshape(1, 3 * C).astype(jnp.float32)
    w_proj = params["w_proj"].astype(compute_dtype)                           # (C, C)
    b_proj = params["b_proj"].reshape(1, C).astype(jnp.float32)

    rel_idx = _relative_position_index(window_size)                           # cached (N, N)
    bias = params["rel_bias_table"][rel_idx.reshape(-1)].reshape(N, N, H)
    bias = jnp.transpose(bias, (2, 0, 1)).astype(jnp.float32)                 # (H, N, N)

    nW = 1 if mask is None else mask.shape[0]
    if mask is not None:
        assert B_ % nW == 0

    itemsize = jnp.dtype(compute_dtype).itemsize
    WB = _choose_window_block(B_, N, C, H, nW, itemsize)
    n_blocks = -(-B_ // WB)
    if n_blocks > 1 and n_blocks % 2:
        n_blocks += 1                              # even grid -> both v7x TCs stay busy
    B_pad = n_blocks * WB
    M = WB * N

    # Per-window additive mask, sliced per grid step by the BlockSpec.
    if mask is None:
        mask_in = jnp.zeros((1, N, N), jnp.float32)
        mask_block = 1
        mask_map = lambda b: (0, 0, 0)
    elif WB % nW == 0:
        # block covers whole mask periods -> a single resident (WB, N, N) tile
        mask_in = jnp.tile(mask.astype(jnp.float32), (WB // nW, 1, 1))
        mask_block = WB
        mask_map = lambda b: (0, 0, 0)
    else:
        # WB < nW (nW % WB == 0): index_map selects the correct mask slice per step
        assert nW % WB == 0
        mask_in = mask.astype(jnp.float32)                                    # (nW, N, N)
        mask_block = WB
        n_mask_blocks = nW // WB
        mask_map = lambda b: (b % n_mask_blocks, 0, 0)

    x2d = x.reshape(B_ * N, C)
    if B_pad != B_:
        x2d = jnp.pad(x2d, ((0, (B_pad - B_) * N), (0, 0)))
    x2d = x2d.astype(compute_dtype)

    kernel = functools.partial(window_attention_kernel, num_heads=H, window_block=WB)

    # TODO(synk): when C < 128 the (M, C) blocks load/store lane-sparse; a lane-dense
    # repack ((rows, C) -> (rows/k, k*C)) would require an in-kernel lane-splitting
    # reshape whose Mosaic lowering is not guaranteed, so it is intentionally omitted.
    out2d = pl.pallas_call(
        kernel,
        out_shape=jax.ShapeDtypeStruct((B_pad * N, C), x.dtype),
        grid=(n_blocks,),
        in_specs=[
            pl.BlockSpec((M, C), lambda b: (b, 0)),            # x rows for WB windows
            pl.BlockSpec((C, 3 * C), lambda b: (0, 0)),        # qkv weight (resident)
            pl.BlockSpec((1, 3 * C), lambda b: (0, 0)),        # qkv bias
            pl.BlockSpec((H, N, N), lambda b: (0, 0, 0)),      # rel-pos bias
            pl.BlockSpec((mask_block, N, N), mask_map),        # window mask slice
            pl.BlockSpec((C, C), lambda b: (0, 0)),            # proj weight
            pl.BlockSpec((1, C), lambda b: (0, 0)),            # proj bias
        ],
        out_specs=pl.BlockSpec((M, C), lambda b: (b, 0)),
        scratch_shapes=[pltpu.VMEM((M, C), jnp.float32)],      # head-concat context
        compiler_params=pltpu.CompilerParams(
            dimension_semantics=("parallel",),
            vmem_limit_bytes=48 * 1024 * 1024),
    )(x2d, w_qkv, b_qkv, bias, mask_in, w_proj, b_proj)

    return out2d[: B_ * N].reshape(B_, N, C)


# ----------------------------------------------------------------------------
# Pure-JAX reference (mirrors the PyTorch forward exactly)
# ----------------------------------------------------------------------------
def window_attention_ref(x, params, window_size, num_heads, mask=None, qk_scale=None):
    B_, N, C = x.shape
    head_dim = C // num_heads
    scale = qk_scale if qk_scale is not None else head_dim ** (-0.5)

    qkv = x @ params["w_qkv"] + params["b_qkv"]                            # (B_, N, 3C)
    qkv = qkv.reshape(B_, N, 3, num_heads, head_dim).transpose(2, 0, 3, 1, 4)
    q, k, v = qkv[0], qkv[1], qkv[2]                                       # (B_, H, N, hd)
    q = q * scale
    attn = jnp.einsum("bhnd,bhmd->bhnm", q, k)

    rel_idx = _relative_position_index(window_size)
    bias = params["rel_bias_table"][rel_idx.reshape(-1)].reshape(N, N, num_heads)
    bias = jnp.transpose(bias, (2, 0, 1))
    attn = attn + bias[None]

    if mask is not None:
        nW = mask.shape[0]
        attn = attn.reshape(B_ // nW, nW, num_heads, N, N) + mask[None, :, None]
        attn = attn.reshape(-1, num_heads, N, N)

    attn = jax.nn.softmax(attn, axis=-1)
    out = jnp.einsum("bhnm,bhmd->bhnd", attn, v)
    out = out.transpose(0, 2, 1, 3).reshape(B_, N, C)
    return out @ params["w_proj"] + params["b_proj"]


# ----------------------------------------------------------------------------
if __name__ == "__main__":
    dim = 32
    window_size = (4, 4)
    num_heads = 4
    N = window_size[0] * window_size[1]
    nW = 2
    batch = 2
    B_ = batch * nW

    key = jax.random.PRNGKey(0)
    kp, kx, km = jax.random.split(key, 3)
    params = init_params(kp, dim, window_size, num_heads)
    x = jax.random.normal(kx, (B_, N, dim), jnp.float32)

    # shifted-window style 0 / -100 additive mask (same convention as Swin)
    mask_bits = (jax.random.uniform(km, (nW, N, N)) > 0.7).astype(jnp.float32)
    mask = mask_bits * (-100.0)
    mask = mask * (1.0 - jnp.eye(N)[None])   # keep the diagonal attendable

    # f32 compute path: tight numerical check vs. the reference
    y0 = window_attention(x, params, window_size, num_heads, mask=None,
                          compute_dtype=jnp.float32)
    y1 = window_attention(x, params, window_size, num_heads, mask=mask,
                          compute_dtype=jnp.float32)
    # bf16 compute path (default: MXU-rate / DMA optimisation), looser check
    y1_bf16 = window_attention(x, params, window_size, num_heads, mask=mask)

    y0_ref = window_attention_ref(x, params, window_size, num_heads, mask=None)
    y1_ref = window_attention_ref(x, params, window_size, num_heads, mask=mask)

    jax.block_until_ready((y0, y1, y1_bf16))

    assert jnp.allclose(y0, y0_ref, rtol=1e-3, atol=1e-3), "no-mask (f32) mismatch"
    assert jnp.allclose(y1, y1_ref, rtol=1e-3, atol=1e-3), "masked (f32) mismatch"
    assert jnp.allclose(y1_bf16, y1_ref, rtol=3e-2, atol=3e-2), "masked (bf16) mismatch"
    print("KERNEL_OK")
</pallas_src>

<mosaic_0001>
module attributes {stable_mosaic.version = 11 : i64} {
  func.func @window_attention_kernel(%arg0: i32, %arg1: memref<64x32xf32, #tpu.memory_space<vmem>>, %arg2: memref<32x96xf32, #tpu.memory_space<vmem>>, %arg3: memref<1x96xf32, #tpu.memory_space<vmem>>, %arg4: memref<4x16x16xf32, #tpu.memory_space<vmem>>, %arg5: memref<1x16x16xf32, #tpu.memory_space<vmem>>, %arg6: memref<32x32xf32, #tpu.memory_space<vmem>>, %arg7: memref<1x32xf32, #tpu.memory_space<vmem>>, %arg8: memref<64x32xf32, #tpu.memory_space<vmem>>, %arg9: memref<64x32xf32, #tpu.memory_space<vmem>>) attributes {dimension_semantics = [#tpu.dimension_semantics<parallel>], iteration_bounds = array<i64: 1>, scalar_prefetch = 0 : i64, scratch_operands = 1 : i64, tpu.core_type = #tpu.core_type<tc>, window_params = [{transform_indices = @transform_0, window_bounds = array<i64: 64, 32>}, {pipeline_mode = #tpu.pipeline_mode<synchronous>, transform_indices = @transform_1, window_bounds = array<i64: 32, 96>}, {pipeline_mode = #tpu.pipeline_mode<synchronous>, transform_indices = @transform_2, window_bounds = array<i64: 1, 96>}, {pipeline_mode = #tpu.pipeline_mode<synchronous>, transform_indices = @transform_3, window_bounds = array<i64: 4, 16, 16>}, {pipeline_mode = #tpu.pipeline_mode<synchronous>, transform_indices = @transform_4, window_bounds = array<i64: 1, 16, 16>}, {pipeline_mode = #tpu.pipeline_mode<synchronous>, transform_indices = @transform_5, window_bounds = array<i64: 32, 32>}, {pipeline_mode = #tpu.pipeline_mode<synchronous>, transform_indices = @transform_6, window_bounds = array<i64: 1, 32>}, {transform_indices = @transform_7, window_bounds = array<i64: 64, 32>}]} {
    %c0 = arith.constant 0 : index
    %c0_0 = arith.constant 0 : index
    %0 = vector.load %arg1[%c0, %c0_0] : memref<64x32xf32, #tpu.memory_space<vmem>>, vector<64x32xf32>
    %c0_1 = arith.constant 0 : index
    %c0_2 = arith.constant 0 : index
    %1 = vector.load %arg2[%c0_1, %c0_2] : memref<32x96xf32, #tpu.memory_space<vmem>>, vector<32x96xf32>
    %cst = arith.constant dense<0.000000e+00> : vector<64x96xf32>
    %2 = tpu.matmul %0, %1, %cst {dimension_numbers = #tpu.dot_dimension_numbers<[1], [0], [0], [1], [0, 0, 1, 1], [], []>} : vector<64x32xf32>, vector<32x96xf32>, vector<64x96xf32> -> vector<64x96xf32>
    %c0_3 = arith.constant 0 : index
    %c0_4 = arith.constant 0 : index
    %3 = vector.load %arg3[%c0_3, %c0_4] : memref<1x96xf32, #tpu.memory_space<vmem>>, vector<1x96xf32>
    %4 = vector.broadcast %3 : vector<1x96xf32> to vector<64x96xf32>
    %5 = arith.addf %2, %4 : vector<64x96xf32>
    %6 = vector.extract_strided_slice %5 {offsets = [0, 0], sizes = [64, 32], strides = [1, 1]} : vector<64x96xf32> to vector<64x32xf32>
    %7 = vector.shape_cast %6 : vector<64x32xf32> to vector<4x16x32xf32>
    %8 = vector.extract_strided_slice %5 {offsets = [0, 32], sizes = [64, 32], strides = [1, 1]} : vector<64x96xf32> to vector<64x32xf32>
    %9 = vector.shape_cast %8 : vector<64x32xf32> to vector<4x16x32xf32>
    %10 = vector.extract_strided_slice %5 {offsets = [0, 64], sizes = [64, 32], strides = [1, 1]} : vector<64x96xf32> to vector<64x32xf32>
    %11 = vector.shape_cast %10 : vector<64x32xf32> to vector<4x16x32xf32>
    %c0_5 = arith.constant 0 : index
    %c0_6 = arith.constant 0 : index
    %c0_7 = arith.constant 0 : index
    %12 = vector.load %arg5[%c0_5, %c0_6, %c0_7] : memref<1x16x16xf32, #tpu.memory_space<vmem>>, vector<1x16x16xf32>
    %13 = vector.extract_strided_slice %7 {offsets = [0, 0, 0], sizes = [4, 16, 8], strides = [1, 1, 1]} : vector<4x16x32xf32> to vector<4x16x8xf32>
    %14 = vector.extract_strided_slice %9 {offsets = [0, 0, 0], sizes = [4, 16, 8], strides = [1, 1, 1]} : vector<4x16x32xf32> to vector<4x16x8xf32>
    %15 = vector.extract_strided_slice %11 {offsets = [0, 0, 0], sizes = [4, 16, 8], strides = [1, 1, 1]} : vector<4x16x32xf32> to vector<4x16x8xf32>
    "tpu.trace_start"() <{level = 10 : i32, message = "wnd,wmd->wnm"}> : () -> ()
    %cst_8 = arith.constant dense<0.000000e+00> : vector<4x16x16xf32>
    %16 = tpu.matmul %13, %14, %cst_8 {dimension_numbers = #tpu.dot_dimension_numbers<[2], [2], [1], [1], [0, 0, 0, 1, 1, 1], [0], [0]>} : vector<4x16x8xf32>, vector<4x16x8xf32>, vector<4x16x16xf32> -> vector<4x16x16xf32>
    "tpu.trace_stop"() : () -> ()
    %c0_9 = arith.constant 0 : index
    %c0_10 = arith.constant 0 : index
    %c0_11 = arith.constant 0 : index
    %17 = vector.load %arg4[%c0_9, %c0_10, %c0_11] : memref<4x16x16xf32, #tpu.memory_space<vmem>>, vector<1x16x16xf32>
    %18 = vector.shape_cast %17 : vector<1x16x16xf32> to vector<16x16xf32>
    %19 = vector.shape_cast %18 : vector<16x16xf32> to vector<1x16x16xf32>
    %20 = vector.broadcast %19 : vector<1x16x16xf32> to vector<4x16x16xf32>
    %21 = arith.addf %16, %20 : vector<4x16x16xf32>
    %22 = vector.broadcast %12 : vector<1x16x16xf32> to vector<4x16x16xf32>
    %23 = arith.addf %21, %22 : vector<4x16x16xf32>
    %cst_12 = arith.constant dense<0xFF800000> : vector<4x16xf32>
    %24 = vector.multi_reduction <maximumf>, %23, %cst_12 [2] : vector<4x16x16xf32> to vector<4x16xf32>
    %25 = vector.shape_cast %24 : vector<4x16xf32> to vector<4x16x1xf32>
    %26 = vector.broadcast %25 : vector<4x16x1xf32> to vector<4x16x16xf32>
    %27 = arith.subf %23, %26 : vector<4x16x16xf32>
    %28 = math.exp %27 : vector<4x16x16xf32>
    %cst_13 = arith.constant dense<0.000000e+00> : vector<4x16xf32>
    %29 = vector.multi_reduction <add>, %28, %cst_13 [2] : vector<4x16x16xf32> to vector<4x16xf32>
    %30 = vector.shape_cast %29 : vector<4x16xf32> to vector<4x16x1xf32>
    %31 = tpu.reciprocal %30 : vector<4x16x1xf32> -> vector<4x16x1xf32>
    %32 = vector.broadcast %31 : vector<4x16x1xf32> to vector<4x16x16xf32>
    %33 = arith.mulf %28, %32 : vector<4x16x16xf32>
    "tpu.trace_start"() <{level = 10 : i32, message = "wnm,wmd->wnd"}> : () -> ()
    %cst_14 = arith.constant dense<0.000000e+00> : vector<4x16x8xf32>
    %34 = tpu.matmul %33, %15, %cst_14 {dimension_numbers = #tpu.dot_dimension_numbers<[2], [1], [1], [2], [0, 0, 0, 1, 1, 2], [0], [0]>} : vector<4x16x16xf32>, vector<4x16x8xf32>, vector<4x16x8xf32> -> vector<4x16x8xf32>
    "tpu.trace_stop"() : () -> ()
    %35 = vector.shape_cast %34 : vector<4x16x8xf32> to vector<64x8xf32>
    %c0_15 = arith.constant 0 : index
    %c0_16 = arith.constant 0 : index
    %36 = vector.load %arg9[%c0_15, %c0_16] : memref<64x32xf32, #tpu.memory_space<vmem>>, vector<64x8xf32>
    tpu.vector_store %arg9[%c0_15, %c0_16], %35 {strides = array<i32>} : memref<64x32xf32, #tpu.memory_space<vmem>>, vector<64x8xf32>,
    %37 = vector.extract_strided_slice %7 {offsets = [0, 0, 8], sizes = [4, 16, 8], strides = [1, 1, 1]} : vector<4x16x32xf32> to vector<4x16x8xf32>
    %38 = vector.extract_strided_slice %9 {offsets = [0, 0, 8], sizes = [4, 16, 8], strides = [1, 1, 1]} : vector<4x16x32xf32> to vector<4x16x8xf32>
    %39 = vector.extract_strided_slice %11 {offsets = [0, 0, 8], sizes = [4, 16, 8], strides = [1, 1, 1]} : vector<4x16x32xf32> to vector<4x16x8xf32>
    "tpu.trace_start"() <{level = 10 : i32, message = "wnd,wmd->wnm"}> : () -> ()
    %cst_17 = arith.constant dense<0.000000e+00> : vector<4x16x16xf32>
    %40 = tpu.matmul %37, %38, %cst_17 {dimension_numbers = #tpu.dot_dimension_numbers<[2], [2], [1], [1], [0, 0, 0, 1, 1, 1], [0], [0]>} : vector<4x16x8xf32>, vector<4x16x8xf32>, vector<4x16x16xf32> -> vector<4x16x16xf32>
    "tpu.trace_stop"() : () -> ()
    %c1 = arith.constant 1 : index
    %c0_18 = arith.constant 0 : index
    %c0_19 = arith.constant 0 : index
    %41 = vector.load %arg4[%c1, %c0_18, %c0_19] : memref<4x16x16xf32, #tpu.memory_space<vmem>>, vector<1x16x16xf32>
    %42 = vector.shape_cast %41 : vector<1x16x16xf32> to vector<16x16xf32>
    %43 = vector.shape_cast %42 : vector<16x16xf32> to vector<1x16x16xf32>
    %44 = vector.broadcast %43 : vector<1x16x16xf32> to vector<4x16x16xf32>
    %45 = arith.addf %40, %44 : vector<4x16x16xf32>
    %46 = vector.broadcast %12 : vector<1x16x16xf32> to vector<4x16x16xf32>
    %47 = arith.addf %45, %46 : vector<4x16x16xf32>
    %cst_20 = arith.constant dense<0xFF800000> : vector<4x16xf32>
    %48 = vector.multi_reduction <maximumf>, %47, %cst_20 [2] : vector<4x16x16xf32> to vector<4x16xf32>
    %49 = vector.shape_cast %48 : vector<4x16xf32> to vector<4x16x1xf32>
    %50 = vector.broadcast %49 : vector<4x16x1xf32> to vector<4x16x16xf32>
    %51 = arith.subf %47, %50 : vector<4x16x16xf32>
    %52 = math.exp %51 : vector<4x16x16xf32>
    %cst_21 = arith.constant dense<0.000000e+00> : vector<4x16xf32>
    %53 = vector.multi_reduction <add>, %52, %cst_21 [2] : vector<4x16x16xf32> to vector<4x16xf32>
    %54 = vector.shape_cast %53 : vector<4x16xf32> to vector<4x16x1xf32>
    %55 = tpu.reciprocal %54 : vector<4x16x1xf32> -> vector<4x16x1xf32>
    %56 = vector.broadcast %55 : vector<4x16x1xf32> to vector<4x16x16xf32>
    %57 = arith.mulf %52, %56 : vector<4x16x16xf32>
    "tpu.trace_start"() <{level = 10 : i32, message = "wnm,wmd->wnd"}> : () -> ()
    %cst_22 = arith.constant dense<0.000000e+00> : vector<4x16x8xf32>
    %58 = tpu.matmul %57, %39, %cst_22 {dimension_numbers = #tpu.dot_dimension_numbers<[2], [1], [1], [2], [0, 0, 0, 1, 1, 2], [0], [0]>} : vector<4x16x16xf32>, vector<4x16x8xf32>, vector<4x16x8xf32> -> vector<4x16x8xf32>
    "tpu.trace_stop"() : () -> ()
    %59 = vector.shape_cast %58 : vector<4x16x8xf32> to vector<64x8xf32>
    %c0_23 = arith.constant 0 : index
    %c8 = arith.constant 8 : index
    %60 = vector.load %arg9[%c0_23, %c8] : memref<64x32xf32, #tpu.memory_space<vmem>>, vector<64x8xf32>
    tpu.vector_store %arg9[%c0_23, %c8], %59 {strides = array<i32>} : memref<64x32xf32, #tpu.memory_space<vmem>>, vector<64x8xf32>,
    %61 = vector.extract_strided_slice %7 {offsets = [0, 0, 16], sizes = [4, 16, 8], strides = [1, 1, 1]} : vector<4x16x32xf32> to vector<4x16x8xf32>
    %62 = vector.extract_strided_slice %9 {offsets = [0, 0, 16], sizes = [4, 16, 8], strides = [1, 1, 1]} : vector<4x16x32xf32> to vector<4x16x8xf32>
    %63 = vector.extract_strided_slice %11 {offsets = [0, 0, 16], sizes = [4, 16, 8], strides = [1, 1, 1]} : vector<4x16x32xf32> to vector<4x16x8xf32>
    "tpu.trace_start"() <{level = 10 : i32, message = "wnd,wmd->wnm"}> : () -> ()
    %cst_24 = arith.constant dense<0.000000e+00> : vector<4x16x16xf32>
    %64 = tpu.matmul %61, %62, %cst_24 {dimension_numbers = #tpu.dot_dimension_numbers<[2], [2], [1], [1], [0, 0, 0, 1, 1, 1], [0], [0]>} : vector<4x16x8xf32>, vector<4x16x8xf32>, vector<4x16x16xf32> -> vector<4x16x16xf32>
    "tpu.trace_stop"() : () -> ()
    %c2 = arith.constant 2 : index
    %c0_25 = arith.constant 0 : index
    %c0_26 = arith.constant 0 : index
    %65 = vector.load %arg4[%c2, %c0_25, %c0_26] : memref<4x16x16xf32, #tpu.memory_space<vmem>>, vector<1x16x16xf32>
    %66 = vector.shape_cast %65 : vector<1x16x16xf32> to vector<16x16xf32>
    %67 = vector.shape_cast %66 : vector<16x16xf32> to vector<1x16x16xf32>
    %68 = vector.broadcast %67 : vector<1x16x16xf32> to vector<4x16x16xf32>
    %69 = arith.addf %64, %68 : vector<4x16x16xf32>
    %70 = vector.broadcast %12 : vector<1x16x16xf32> to vector<4x16x16xf32>
    %71 = arith.addf %69, %70 : vector<4x16x16xf32>
    %cst_27 = arith.constant dense<0xFF800000> : vector<4x16xf32>
    %72 = vector.multi_reduction <maximumf>, %71, %cst_27 [2] : vector<4x16x16xf32> to vector<4x16xf32>
    %73 = vector.shape_cast %72 : vector<4x16xf32> to vector<4x16x1xf32>
    %74 = vector.broadcast %73 : vector<4x16x1xf32> to vector<4x16x16xf32>
    %75 = arith.subf %71, %74 : vector<4x16x16xf32>
    %76 = math.exp %75 : vector<4x16x16xf32>
    %cst_28 = arith.constant dense<0.000000e+00> : vector<4x16xf32>
    %77 = vector.multi_reduction <add>, %76, %cst_28 [2] : vector<4x16x16xf32> to vector<4x16xf32>
    %78 = vector.shape_cast %77 : vector<4x16xf32> to vector<4x16x1xf32>
    %79 = tpu.reciprocal %78 : vector<4x16x1xf32> -> vector<4x16x1xf32>
    %80 = vector.broadcast %79 : vector<4x16x1xf32> to vector<4x16x16xf32>
    %81 = arith.mulf %76, %80 : vector<4x16x16xf32>
    "tpu.trace_start"() <{level = 10 : i32, message = "wnm,wmd->wnd"}> : () -> ()
    %cst_29 = arith.constant dense<0.000000e+00> : vector<4x16x8xf32>
    %82 = tpu.matmul %81, %63, %cst_29 {dimension_numbers = #tpu.dot_dimension_numbers<[2], [1], [1], [2], [0, 0, 0, 1, 1, 2], [0], [0]>} : vector<4x16x16xf32>, vector<4x16x8xf32>, vector<4x16x8xf32> -> vector<4x16x8xf32>
    "tpu.trace_stop"() : () -> ()
    %83 = vector.shape_cast %82 : vector<4x16x8xf32> to vector<64x8xf32>
    %c0_30 = arith.constant 0 : index
    %c16 = arith.constant 16 : index
    %84 = vector.load %arg9[%c0_30, %c16] : memref<64x32xf32, #tpu.memory_space<vmem>>, vector<64x8xf32>
    tpu.vector_store %arg9[%c0_30, %c16], %83 {strides = array<i32>} : memref<64x32xf32, #tpu.memory_space<vmem>>, vector<64x8xf32>,
    %85 = vector.extract_strided_slice %7 {offsets = [0, 0, 24], sizes = [4, 16, 8], strides = [1, 1, 1]} : vector<4x16x32xf32> to vector<4x16x8xf32>
    %86 = vector.extract_strided_slice %9 {offsets = [0, 0, 24], sizes = [4, 16, 8], strides = [1, 1, 1]} : vector<4x16x32xf32> to vector<4x16x8xf32>
    %87 = vector.extract_strided_slice %11 {offsets = [0, 0, 24], sizes = [4, 16, 8], strides = [1, 1, 1]} : vector<4x16x32xf32> to vector<4x16x8xf32>
    "tpu.trace_start"() <{level = 10 : i32, message = "wnd,wmd->wnm"}> : () -> ()
    %cst_31 = arith.constant dense<0.000000e+00> : vector<4x16x16xf32>
    %88 = tpu.matmul %85, %86, %cst_31 {dimension_numbers = #tpu.dot_dimension_numbers<[2], [2], [1], [1], [0, 0, 0, 1, 1, 1], [0], [0]>} : vector<4x16x8xf32>, vector<4x16x8xf32>, vector<4x16x16xf32> -> vector<4x16x16xf32>
    "tpu.trace_stop"() : () -> ()
    %c3 = arith.constant 3 : index
    %c0_32 = arith.constant 0 : index
    %c0_33 = arith.constant 0 : index
    %89 = vector.load %arg4[%c3, %c0_32, %c0_33] : memref<4x16x16xf32, #tpu.memory_space<vmem>>, vector<1x16x16xf32>
    %90 = vector.shape_cast %89 : vector<1x16x16xf32> to vector<16x16xf32>
    %91 = vector.shape_cast %90 : vector<16x16xf32> to vector<1x16x16xf32>
    %92 = vector.broadcast %91 : vector<1x16x16xf32> to vector<4x16x16xf32>
    %93 = arith.addf %88, %92 : vector<4x16x16xf32>
    %94 = vector.broadcast %12 : vector<1x16x16xf32> to vector<4x16x16xf32>
    %95 = arith.addf %93, %94 : vector<4x16x16xf32>
    %cst_34 = arith.constant dense<0xFF800000> : vector<4x16xf32>
    %96 = vector.multi_reduction <maximumf>, %95, %cst_34 [2] : vector<4x16x16xf32> to vector<4x16xf32>
    %97 = vector.shape_cast %96 : vector<4x16xf32> to vector<4x16x1xf32>
    %98 = vector.broadcast %97 : vector<4x16x1xf32> to vector<4x16x16xf32>
    %99 = arith.subf %95, %98 : vector<4x16x16xf32>
    %100 = math.exp %99 : vector<4x16x16xf32>
    %cst_35 = arith.constant dense<0.000000e+00> : vector<4x16xf32>
    %101 = vector.multi_reduction <add>, %100, %cst_35 [2] : vector<4x16x16xf32> to vector<4x16xf32>
    %102 = vector.shape_cast %101 : vector<4x16xf32> to vector<4x16x1xf32>
    %103 = tpu.reciprocal %102 : vector<4x16x1xf32> -> vector<4x16x1xf32>
    %104 = vector.broadcast %103 : vector<4x16x1xf32> to vector<4x16x16xf32>
    %105 = arith.mulf %100, %104 : vector<4x16x16xf32>
    "tpu.trace_start"() <{level = 10 : i32, message = "wnm,wmd->wnd"}> : () -> ()
    %cst_36 = arith.constant dense<0.000000e+00> : vector<4x16x8xf32>
    %106 = tpu.matmul %105, %87, %cst_36 {dimension_numbers = #tpu.dot_dimension_numbers<[2], [1], [1], [2], [0, 0, 0, 1, 1, 2], [0], [0]>} : vector<4x16x16xf32>, vector<4x16x8xf32>, vector<4x16x8xf32> -> vector<4x16x8xf32>
    "tpu.trace_stop"() : () -> ()
    %107 = vector.shape_cast %106 : vector<4x16x8xf32> to vector<64x8xf32>
    %c0_37 = arith.constant 0 : index
    %c24 = arith.constant 24 : index
    %108 = vector.load %arg9[%c0_37, %c24] : memref<64x32xf32, #tpu.memory_space<vmem>>, vector<64x8xf32>
    tpu.vector_store %arg9[%c0_37, %c24], %107 {strides = array<i32>} : memref<64x32xf32, #tpu.memory_space<vmem>>, vector<64x8xf32>,
    %c0_38 = arith.constant 0 : index
    %c0_39 = arith.constant 0 : index
    %109 = vector.load %arg9[%c0_38, %c0_39] : memref<64x32xf32, #tpu.memory_space<vmem>>, vector<64x32xf32>
    %c0_40 = arith.constant 0 : index
    %c0_41 = arith.constant 0 : index
    %110 = vector.load %arg6[%c0_40, %c0_41] : memref<32x32xf32, #tpu.memory_space<vmem>>, vector<32x32xf32>
    %cst_42 = arith.constant dense<0.000000e+00> : vector<64x32xf32>
    %111 = tpu.matmul %109, %110, %cst_42 {dimension_numbers = #tpu.dot_dimension_numbers<[1], [0], [0], [1], [0, 0, 1, 1], [], []>} : vector<64x32xf32>, vector<32x32xf32>, vector<64x32xf32> -> vector<64x32xf32>
    %c0_43 = arith.constant 0 : index
    %c0_44 = arith.constant 0 : index
    %112 = vector.load %arg7[%c0_43, %c0_44] : memref<1x32xf32, #tpu.memory_space<vmem>>, vector<1x32xf32>
    %113 = vector.broadcast %112 : vector<1x32xf32> to vector<64x32xf32>
    %114 = arith.addf %111, %113 : vector<64x32xf32>
    %c0_45 = arith.constant 0 : index
    %c0_46 = arith.constant 0 : index
    %115 = vector.load %arg8[%c0_45, %c0_46] : memref<64x32xf32, #tpu.memory_space<vmem>>, vector<64x32xf32>
    tpu.vector_store %arg8[%c0_45, %c0_46], %114 {strides = array<i32>} : memref<64x32xf32, #tpu.memory_space<vmem>>, vector<64x32xf32>,
    return
  }
  func.func @transform_0(%arg0: i32) -> (i32, i32) {
    %c0_i32 = arith.constant 0 : i32
    %c0_i32_0 = arith.constant 0 : i32
    return %arg0, %c0_i32 : i32, i32
  }
  func.func @transform_1(%arg0: i32) -> (i32, i32) {
    %c0_i32 = arith.constant 0 : i32
    %c0_i32_0 = arith.constant 0 : i32
    %c0_i32_1 = arith.constant 0 : i32
    return %c0_i32, %c0_i32_0 : i32, i32
  }
  func.func @transform_2(%arg0: i32) -> (i32, i32) {
    %c0_i32 = arith.constant 0 : i32
    %c0_i32_0 = arith.constant 0 : i32
    %c0_i32_1 = arith.constant 0 : i32
    return %c0_i32, %c0_i32_0 : i32, i32
  }
  func.func @transform_3(%arg0: i32) -> (i32, i32, i32) {
    %c0_i32 = arith.constant 0 : i32
    %c0_i32_0 = arith.constant 0 : i32
    %c0_i32_1 = arith.constant 0 : i32
    %c0_i32_2 = arith.constant 0 : i32
    return %c0_i32, %c0_i32_0, %c0_i32_1 : i32, i32, i32
  }
  func.func @transform_4(%arg0: i32) -> (i32, i32, i32) {
    %c0_i32 = arith.constant 0 : i32
    %c0_i32_0 = arith.constant 0 : i32
    %c0_i32_1 = arith.constant 0 : i32
    %c0_i32_2 = arith.constant 0 : i32
    return %c0_i32, %c0_i32_0, %c0_i32_1 : i32, i32, i32
  }
  func.func @transform_5(%arg0: i32) -> (i32, i32) {
    %c0_i32 = arith.constant 0 : i32
    %c0_i32_0 = arith.constant 0 : i32
    %c0_i32_1 = arith.constant 0 : i32
    return %c0_i32, %c0_i32_0 : i32, i32
  }
  func.func @transform_6(%arg0: i32) -> (i32, i32) {
    %c0_i32 = arith.constant 0 : i32
    %c0_i32_0 = arith.constant 0 : i32
    %c0_i32_1 = arith.constant 0 : i32
    return %c0_i32, %c0_i32_0 : i32, i32
  }
  func.func @transform_7(%arg0: i32) -> (i32, i32) {
    %c0_i32 = arith.constant 0 : i32
    %c0_i32_0 = arith.constant 0 : i32
    return %arg0, %c0_i32 : i32, i32
  }
}

</mosaic_0001>

<bundles_post_ra>
// kernel: tpu_custom_call.1
= control target key start
LH: loop header
LB: loop body
LE: loop exit
PB: predicated region body
PF: predicated region fallthrough
CT: control target
= control target key end

     0   :  { %12 = vsyncpa [#allocation4], 0  ;;  %s5394_s0 = inlined_call_operand.vmem [shape: f32[64,32], index: 0, kind: input, shape index: {}]   ;;  %s5395_s1 = inlined_call_operand.vmem [shape: f32[32,96], index: 1, kind: input, shape index: {}]   ;;  %s5396_s2 = inlined_call_operand.vmem [shape: f32[1,96], index: 2, kind: input, shape index: {}]   ;;  %s5397_s3 = inlined_call_operand.vmem [shape: f32[4,16,16], index: 3, kind: input, shape index: {}]   ;;  %s5398_s4 = inlined_call_operand.hbm [shape: f32[1,16,16], index: 4, kind: input, shape index: {}]   ;;  %s5399_s5 = inlined_call_operand.hbm [shape: f32[32,32], index: 5, kind: input, shape index: {}]   ;;  %s5400_s6 = inlined_call_operand.vmem [shape: f32[1,32], index: 6, kind: input, shape index: {}]   ;;  %s5401_s7 = inlined_call_operand.vmem [shape: f32[64,32], index: 7, kind: output, shape index: {}]  }
   0x1   :  { %13 = vsyncpa [#allocation6], 0  ;;  %s4470_s24 = smov [#allocation3]  }
   0x2   :  { %s27_s25 = sshll.u32 %s4470_s24, 4  ;;  %s28_s25 = int_to_ptr.vmem [resolvable:$true] %s27_s25 }
   0x3   :  { %s4434_s26 = scalar_lea.vmem %s28_s25, 256  ;;  %p4439_p1 = scmp.lt.s32.totalorder %s28_s25, %s28_s25 }
   0x4   :  { %p4435_p0 = scmp.ne.s32.totalorder %s28_s25, %s4434_s26  ;;  %p4440_p2 = scmp.lt.s32.totalorder %s4434_s26, %s4434_s26 }
   0x6   :  { %p4441_p3 = por %p4440_p2, %p4439_p1 }
   0x8   :  { %p4442_p4 = pnand %p4441_p3, %p4435_p0 }
   0xa   :  { %4445 = shalt.err (!%p4442_p4)
}
   0xb   :  { %s4471_s27 = smov 128   ;;  %s4472_s28 = smov 8  }
   0xc   :  { %33 = dma.hbm_to_vmem [thread:$0]  %s5398_s4, 256, %s28_s25, [#allocation4], %s4471_s27, %s4471_s27, %s4472_s28  }
   0xd   :  { %s4473_s8 = smov [#allocation5]  }
   0xe   :  { %s39_s9 = sshll.u32 %s4473_s8, 4  ;;  %s40_s9 = int_to_ptr.vmem [resolvable:$true] %s39_s9 }
   0xf   :  { %s4454_s10 = scalar_lea.vmem %s40_s9, 512  ;;  %p4459_p6 = scmp.lt.s32.totalorder %s40_s9, %s40_s9 }
  0x10   :  { %p4455_p5 = scmp.ne.s32.totalorder %s40_s9, %s4454_s10  ;;  %p4460_p7 = scmp.lt.s32.totalorder %s4454_s10, %s4454_s10 }
  0x12   :  { %p4461_p8 = por %p4460_p7, %p4459_p6 }
  0x14   :  { %p4462_p9 = pnand %p4461_p8, %p4455_p5 }
  0x16   :  { %4465 = shalt.err (!%p4462_p9)
}
  0x17   :  { %45 = dma.hbm_to_vmem [thread:$0]  %s5399_s5, 512, %s40_s9, [#allocation6], %s4471_s27, %s4471_s27, %s4472_s28  }
  0x18   :  { %4466 = dma.done.wait [#allocation4], 256  }
  0x19   :  { %4467 = vsyncadd [#allocation4], 4294967040 }
  0x1a   :  { %4468 = dma.done.wait [#allocation6], 512  }
  0x1b   :  { %4469 = vsyncadd [#allocation6], 4294966784  ;;  %vm73_vm0 = vcmask 261120   ;;  %v65_v0 = vld [vmem:[%s5395_s1 + $0x18] sm:$0xff]  ;;  %v64_v1 = vld [vmem:[%s5395_s1 + $0x10] sm:$0xff]  ;;  %vm213_vm1 = vcmask 64512  }
  0x1c   :  { %4007 = vmatprep.subr.mxu0 %v65_v0  ;;  %v54_v2 = vld [vmem:[%s5394_s0] sm:$0xff]  ;;  %4271 = vmatprep.subr.mxu1 %v65_v0  ;;  %v63_v3 = vld [vmem:[%s5395_s1 + $0x8] sm:$0xff]  ;;  %v56_v6 = vld [vmem:[%s5394_s0 + $0x10] sm:$0xff]  ;;  %s4474_s13 = smov 96   ;;  %vm572_vm2 = vcmask 130048   ;;  %s4476_s17 = smov 88  }
  0x1d   :  { %4008 = vmatpush3.msra.mxu0 %v65_v0  ;;  %4015 = vmatprep.mubr.msk.f32.mxu0 %vm73_vm0, %v54_v2  ;;  %v62_v4 = vld [vmem:[%s5395_s1] sm:$0xff]  ;;  %v55_v5 = vld [vmem:[%s5394_s0 + $0x8] sm:$0xff]  ;;  %v60_v9 = vld [vmem:[%s5394_s0 + $0x30] sm:$0xff]  ;;  %s4477_s5 = smov 120   ;;  %s4478_s18 = smov 56   ;;  %vm1860_vm3 = vcmask 130112  }
  0x1e   :  { %4009 = vmatprep.subr.mxu0 %v64_v1  ;;  %4275 = vmatpush3.msra.mxu1 %v65_v0  ;;  %v58_v7 = vld [vmem:[%s5394_s0 + $0x20] sm:$0xff]  ;;  %v59_v8 = vld [vmem:[%s5394_s0 + $0x28] sm:$0xff]  ;;  %v57_v10 = vld [vmem:[%s5394_s0 + $0x18] sm:$0xff]  ;;  %s4479_s23 = smov 80   ;;  %s4480_s24 = smov 112   ;;  %vm2712_vm4 = vcmask 195712  }
  0x1f   :  { %4010 = vmatpush3.msra.mxu0 %v64_v1  ;;  %4272 = vmatprep.subr.mxu1 %v64_v1  ;;  %v61_v11 = vld [vmem:[%s5394_s0 + $0x38] sm:$0xff]  ;;  %v3735_v12 = vld [vmem:[%s5396_s2] ss:$0 sm:$0xff]  ;;  %s4475_s0 = smov 64   ;;  %v206_v38 = vld [vmem:[%s5397_s3 + $0x8] sm:$0xff]  ;;  %s4481_s25 = smov 48  }
  0x20   :  { %4011 = vmatprep.subr.mxu0 %v63_v3  ;;  %4276 = vmatpush3.msra.mxu1 %v64_v1  ;;  %v4643_v40 = vld [vmem:[#allocation3 + $0x8] sm:$0xff]  ;;  %v205_v45 = vld [vmem:[%s5397_s3] sm:$0xff]  ;;  %s4482_s30 = smov 72   ;;  %s4483_s8 = smov 104   ;;  %vm3564_vm5 = vcmask 261312  }
  0x21   :  { %4012 = vmatpush3.msra.mxu0 %v63_v3  ;;  %4273 = vmatprep.subr.mxu1 %v63_v3  ;;  %v4651_v53 = vld [vmem:[#allocation3] sm:$0xff]  ;;  %s4485_s4 = smov 16  }
  0x22   :  { %4013 = vmatprep.subr.mxu0 %v62_v4  ;;  %4277 = vmatpush3.msra.mxu1 %v63_v3 }
  0x23   :  { %4014 = vmatpush3.msra.mxu0 %v62_v4  ;;  %4274 = vmatprep.subr.mxu1 %v62_v4 }
  0x24   :  { %4016 = vmatmul.mubr.msk.f32.vlgmr.msra.gmra.mxu0 %vm73_vm0, %v55_v5  ;;  %4278 = vmatpush3.msra.mxu1 %v62_v4 }
  0x25   :  { %4018 = vmatprep.mubr.msk.f32.mxu0 %vm73_vm0, %v56_v6  ;;  %4021 = vmatprep.mubr.msk.f32.mxu1 %vm73_vm0, %v58_v7 }
  0x26   :  { %4022 = vmatmul.mubr.msk.f32.vlgmr.msra.gmra.mxu1 %vm73_vm0, %v59_v8 }
  0x27   :  { %4024 = vmatprep.mubr.msk.f32.mxu1 %vm73_vm0, %v60_v9 }
  0x28   :  { %4019 = vmatmul.mubr.msk.f32.gmra.mxu0 %vm73_vm0, %v57_v10 }
  0x2a   :  { %4025 = vmatmul.mubr.msk.f32.gmra.mxu1 %vm73_vm0, %v61_v11 }
  0xe4   :  { %v4017_v13 = vpop.f32.mrf.mxu0 }
  0xe5   :  { %v4582_v14 = vadd.f32 %v4017_v13, %v3735_v12 }
  0xe6   :  { %v164_v15 = vpop.f32.mrf.mxu0  ;;  %v4023_v16 = vpop.f32.mrf.mxu1 }
  0xe7   :  { %v4584_v17 = vadd.f32 %v3735_v12, %v164_v15  ;;  %211 = vrot.lane.b32.xlu0 %v4582_v14, %s4474_s13  ;;  %v4597_v24 = vadd.f32 %v4023_v16, %v3735_v12 }
  0xe8   :  { %v4020_v18 = vpop.f32.mrf.mxu0  ;;  %v184_v19 = vpop.f32.mrf.mxu1 }
  0xe9   :  { %v4587_v20 = vadd.f32 %v4020_v18, %v3735_v12  ;;  %4031 = vmatprep.mubr.msk.f32.mxu1 %vm213_vm1, %v4584_v17  ;;  %v4591_v22 = vadd.f32 %v3735_v12, %v184_v19 }
  0xea   :  { %v174_v21 = vpop.f32.mrf.mxu0  ;;  %v4026_v25 = vpop.f32.mrf.mxu1 }
  0xeb   :  { %301 = vrot.lane.b32.xlu1 %v4587_v20, %s4474_s13  ;;  %209 = vrot.lane.b32.xlu0 %v4584_v17, %s4474_s13  ;;  %v4595_v23 = vadd.f32 %v3735_v12, %v174_v21  ;;  %v4603_v26 = vadd.f32 %v4026_v25, %v3735_v12 }
  0xec   :  { %4045 = vmatprep.mubr.msk.f32.mxu0 %vm213_vm1, %v4591_v22  ;;  %v194_v27 = vpop.f32.mrf.mxu1 }
  0xed   :  { %v4606_v28 = vadd.f32 %v3735_v12, %v194_v27 }
  0xef   :  { %299 = vrot.lane.b32.xlu1 %v4595_v23, %s4474_s13  ;;  %390 = vrot.lane.b32.xlu0 %v4597_v24, %s4474_s13 }
  0xf3   :  { %388 = vrot.lane.b32.xlu1 %v4591_v22, %s4474_s13  ;;  %479 = vrot.lane.b32.xlu0 %v4603_v26, %s4474_s13 }
  0xf7   :  { %477 = vrot.lane.b32.xlu1 %v4606_v28, %s4474_s13 }
  0xfb   :  { %663 = vrot.lane.b32.xlu1 %v4582_v14, %s4475_s0 }
 0x159   :  { %v212_v29 = vpop.permute.xlu0 %211 }
 0x15a   :  { %4027 = vmatprep.subr.msk.mxu1 %vm213_vm1, %v212_v29 }
 0x15b   :  { %4028 = vmatpush3.xpose.msk.msra.mxu1 %vm213_vm1, %v212_v29 }
 0x15d   :  { %v302_v30 = vpop.permute.xlu1 %301  ;;  %v210_v31 = vpop.permute.xlu0 %209 }
 0x15e   :  { %4029 = vmatprep.subr.msk.mxu1 %vm213_vm1, %v210_v31 }
 0x15f   :  { %4030 = vmatpush3.xpose.msk.msra.mxu1 %vm213_vm1, %v210_v31 }
 0x160   :  { %4034 = vmatprep.subr.msk.mxu1 %vm213_vm1, %v302_v30 }
 0x161   :  { %v300_v32 = vpop.permute.xlu1 %299  ;;  %v391_v33 = vpop.permute.xlu0 %390 }
 0x162   :  { %4032 = vmatmul.mubr.msk.f32.vlgmr.msra.gmra.mxu1 %vm213_vm1, %v4582_v14  ;;  %4041 = vmatprep.subr.msk.mxu0 %vm213_vm1, %v391_v33 }
 0x163   :  { %4035 = vmatpush3.xpose.msk.msra.mxu1 %vm213_vm1, %v302_v30  ;;  %4038 = vmatprep.mubr.msk.f32.mxu1 %vm213_vm1, %v4595_v23 }
 0x164   :  { %4042 = vmatpush3.xpose.msk.msra.mxu0 %vm213_vm1, %v391_v33  ;;  %4036 = vmatprep.subr.msk.mxu1 %vm213_vm1, %v300_v32 }
 0x165   :  { %v389_v34 = vpop.permute.xlu1 %388  ;;  %v480_v35 = vpop.permute.xlu0 %479 }
 0x166   :  { %4043 = vmatprep.subr.msk.mxu0 %vm213_vm1, %v389_v34 }
 0x167   :  { %4037 = vmatpush3.xpose.msk.msra.mxu1 %vm213_vm1, %v300_v32 }
 0x168   :  { %4044 = vmatpush3.xpose.msk.msra.mxu0 %vm213_vm1, %v389_v34  ;;  %4048 = vmatprep.subr.msk.mxu1 %vm213_vm1, %v480_v35 }
 0x169   :  { %v478_v36 = vpop.permute.xlu1 %477 }
 0x16a   :  { %4039 = vmatmul.mubr.msk.f32.vlgmr.msra.gmra.mxu1 %vm213_vm1, %v4587_v20 }
 0x16b   :  { %4046 = vmatmul.mubr.msk.f32.vlgmr.msra.gmra.mxu0 %vm213_vm1, %v4597_v24  ;;  %4049 = vmatpush3.xpose.msk.msra.mxu1 %vm213_vm1, %v480_v35 }
 0x16c   :  { %4052 = vmatprep.mubr.msk.f32.mxu1 %vm213_vm1, %v4606_v28  ;;  %4050 = vmatprep.subr.msk.mxu1 %vm213_vm1, %v478_v36 }
 0x16d   :  { %v664_v37 = vpop.permute.xlu1 %663 }
 0x16e   :  { %4055 = vmatprep.subr.mxu0 %v664_v37 }
 0x16f   :  { %4051 = vmatpush3.xpose.msk.msra.mxu1 %vm213_vm1, %v478_v36  ;;  %4056 = vmatpush3.msra.mxu0 %v664_v37 }
 0x172   :  { %4053 = vmatmul.mubr.msk.f32.vlgmr.msra.gmra.mxu1 %vm213_vm1, %v4603_v26 }
 0x222   :  { %v4033_v39 = vpop.f32.mrf.mxu1 }
 0x223   :  { %v294_v41 = vadd.f32 %v4033_v39, %v206_v38 }
 0x224   :  { %v288_v44 = vpop.f32.mrf.mxu1 }
 0x225   :  { %v565_v42 = vadd.f32 %v294_v41, %v4643_v40  ;;  %v289_v49 = vadd.f32 %v288_v44, %v205_v45 }
 0x227   :  { %v576_v43 = vsel %vm572_vm2, %v565_v42, -inf  ;;  %v564_v58 = vadd.f32 %v289_v49, %v4651_v53 }
 0x228   :  { %577 = vmax.xlane.f32.xlu1 %v576_v43 }
 0x229   :  { %v573_v61 = vsel %vm572_vm2, %v564_v58, -inf }
 0x22a   :  { %v4040_v46 = vpop.f32.mrf.mxu1 }
 0x22b   :  { %v383_v47 = vadd.f32 %v4040_v46, %v206_v38  ;;  %v4047_v48 = vpop.f32.mrf.mxu0 }
 0x22c   :  { %v472_v50 = vadd.f32 %v4047_v48, %v206_v38  ;;  %v377_v59 = vpop.f32.mrf.mxu1 }
 0x22d   :  { %v466_v51 = vpop.f32.mrf.mxu0  ;;  %v567_v52 = vadd.f32 %v383_v47, %v4643_v40  ;;  %v378_v60 = vadd.f32 %v377_v59, %v205_v45 }
 0x22e   :  { %v569_v54 = vadd.f32 %v472_v50, %v4643_v40  ;;  %v467_v56 = vadd.f32 %v466_v51, %v205_v45 }
 0x22f   :  { %v582_v55 = vsel %vm572_vm2, %v567_v52, -inf  ;;  %v566_v2 = vadd.f32 %v378_v60, %v4651_v53 }
 0x230   :  { %v588_v57 = vsel %vm572_vm2, %v569_v54, -inf  ;;  %583 = vmax.xlane.f32.xlu1 %v582_v55  ;;  %v568_v62 = vadd.f32 %v467_v56, %v4651_v53 }
 0x231   :  { %589 = vmax.xlane.f32.xlu0 %v588_v57  ;;  %v579_v3 = vsel %vm572_vm2, %v566_v2, -inf }
 0x232   :  { %v4054_v63 = vpop.f32.mrf.mxu1  ;;  %v585_v1 = vsel %vm572_vm2, %v568_v62, -inf }
 0x233   :  { %v561_v0 = vadd.f32 %v4054_v63, %v206_v38 }
 0x234   :  { %v555_v6 = vpop.f32.mrf.mxu1 }
 0x235   :  { %574 = vmax.xlane.f32.xlu0 %v573_v61  ;;  %v571_v4 = vadd.f32 %v561_v0, %v4643_v40  ;;  %v556_v7 = vadd.f32 %v555_v6, %v205_v45 }
 0x237   :  { %v594_v5 = vsel %vm572_vm2, %v571_v4, -inf  ;;  %v4693_v8 = vadd.f32 %v556_v7, %v4651_v53 }
 0x239   :  { %586 = vmax.xlane.f32.xlu0 %v585_v1  ;;  %v591_v9 = vsel %vm572_vm2, %v4693_v8, -inf }
 0x23d   :  { %580 = vmax.xlane.f32.xlu0 %v579_v3 }
 0x241   :  { %595 = vmax.xlane.f32.xlu0 %v594_v5  ;;  %750 = vrot.lane.b32.xlu1 %v4587_v20, %s4475_s0 }
 0x245   :  { %837 = vrot.lane.b32.xlu1 %v4597_v24, %s4475_s0 }
 0x249   :  { %835 = vrot.lane.b32.xlu1 %v4591_v22, %s4475_s0 }
 0x24d   :  { %1026 = vrot.lane.b32.xlu1 %v4582_v14, %s4476_s17 }
 0x251   :  { %1024 = vrot.lane.b32.xlu1 %v4584_v17, %s4476_s17 }
 0x255   :  { %1020 = vrot.lane.b32.xlu1 %v4584_v17, %s4477_s5 }
 0x257   :  { %661 = vrot.lane.b32.xlu0 %v4584_v17, %s4475_s0 }
 0x259   :  { %1208 = vrot.lane.b32.xlu1 %v4597_v24, %s4476_s17 }
 0x25b   :  { %748 = vrot.lane.b32.xlu0 %v4595_v23, %s4475_s0 }
 0x25f   :  { %924 = vrot.lane.b32.xlu0 %v4603_v26, %s4475_s0 }
 0x263   :  { %922 = vrot.lane.b32.xlu0 %v4606_v28, %s4475_s0 }
 0x267   :  { %1117 = vrot.lane.b32.xlu0 %v4587_v20, %s4476_s17 }
 0x26b   :  { %1115 = vrot.lane.b32.xlu0 %v4595_v23, %s4476_s17 }
 0x26f   :  { %1022 = vrot.lane.b32.xlu0 %v4582_v14, %s4477_s5 }
 0x27d   :  { %592 = vmax.xlane.f32.xlu1 %v591_v9 }
 0x28e   :  { %1111 = vrot.lane.b32.xlu1 %v4595_v23, %s4477_s5 }
 0x2b1   :  { %v578_v10 = vpop.xlane.xlu1 %577 }
 0x2b2   :  { %v598_v11 = vsub.f32 %v565_v42, %v578_v10 }
 0x2b4   :  { %v607_v12 = vmul.f32 1.442695, %v598_v11 }
 0x2b6   :  { %4296 = vpow2.f32 %v607_v12 }
 0x2b9   :  { %v584_v13 = vpop.xlane.xlu1 %583 }
 0x2ba   :  { %v590_v15 = vpop.xlane.xlu0 %589  ;;  %v600_v19 = vsub.f32 %v567_v52, %v584_v13 }
 0x2bb   :  { %v602_v16 = vsub.f32 %v569_v54, %v590_v15 }
 0x2bc   :  { %v611_v29 = vmul.f32 1.442695, %v600_v19 }
 0x2bd   :  { %v615_v18 = vmul.f32 1.442695, %v602_v16  ;;  %v751_v21 = vpop.permute.xlu1 %750 }
 0x2be   :  { %v575_v25 = vpop.xlane.xlu0 %574  ;;  %4062 = vmatprep.subr.mxu1 %v751_v21 }
 0x2bf   :  { %4298 = vpow2.f32 %v615_v18  ;;  %v597_v27 = vsub.f32 %v564_v58, %v575_v25  ;;  %4063 = vmatpush3.msra.mxu1 %v751_v21 }
 0x2c1   :  { %v605_v30 = vmul.f32 1.442695, %v597_v27  ;;  %v4709_v47 = vpop.permute.xlu1 %837 }
 0x2c2   :  { %v587_v31 = vpop.xlane.xlu0 %586 }
 0x2c3   :  { %v4699_v32 = vpop.eup %4296  ;;  %4300 = vpow2.f32 %v605_v30  ;;  %v601_v33 = vsub.f32 %v568_v62, %v587_v31 }
 0x2c4   :  { %v624_v34 = vsel %vm572_vm2, %v4699_v32, 0.0  ;;  %4302 = vpow2.f32 %v611_v29 }
 0x2c5   :  { %v613_v35 = vmul.f32 1.442695, %v601_v33  ;;  %625 = vadd.xlane.f32.xlu0 %v624_v34  ;;  %v836_v60 = vpop.permute.xlu1 %835 }
 0x2c6   :  { %v581_v36 = vpop.xlane.xlu0 %580 }
 0x2c7   :  { %4304 = vpow2.f32 %v613_v35  ;;  %v599_v37 = vsub.f32 %v566_v2, %v581_v36 }
 0x2c9   :  { %v609_v38 = vmul.f32 1.442695, %v599_v37  ;;  %v1027_v61 = vpop.permute.xlu1 %1026 }
 0x2ca   :  { %v596_v39 = vpop.xlane.xlu0 %595 }
 0x2cb   :  { %4306 = vpow2.f32 %v609_v38  ;;  %v604_v41 = vsub.f32 %v571_v4, %v596_v39 }
 0x2cc   :  { %v4703_v42 = vpop.eup %4298 }
 0x2cd   :  { %v619_v43 = vmul.f32 1.442695, %v604_v41  ;;  %v636_v44 = vsel %vm572_vm2, %v4703_v42, 0.0  ;;  %v1025_v62 = vpop.permute.xlu1 %1024 }
 0x2ce   :  { %637 = vadd.xlane.f32.xlu0 %v636_v44  ;;  %v662_v45 = vpop.permute.xlu0 %661 }
 0x2cf   :  { %4308 = vpow2.f32 %v619_v43  ;;  %4057 = vmatprep.subr.mxu0 %v662_v45 }
 0x2d0   :  { %v4707_v46 = vpop.eup %4300  ;;  %4058 = vmatpush3.msra.mxu0 %v662_v45 }
 0x2d1   :  { %4069 = vmatprep.subr.mxu0 %v4709_v47  ;;  %v621_v48 = vsel %vm572_vm2, %v4707_v46, 0.0  ;;  %v4714_v49 = vpop.eup %4302  ;;  %v1021_v63 = vpop.permute.xlu1 %1020 }
 0x2d2   :  { %622 = vadd.xlane.f32.xlu1 %v621_v48  ;;  %v749_v50 = vpop.permute.xlu0 %748  ;;  %v630_v52 = vsel %vm572_vm2, %v4714_v49, 0.0 }
 0x2d3   :  { %4064 = vmatprep.subr.mxu1 %v749_v50 }
 0x2d4   :  { %v4716_v51 = vpop.eup %4304  ;;  %4065 = vmatpush3.msra.mxu1 %v749_v50 }
 0x2d5   :  { %v633_v54 = vsel %vm572_vm2, %v4716_v51, 0.0  ;;  %v4743_v0 = vpop.permute.xlu1 %1208 }
 0x2d6   :  { %631 = vadd.xlane.f32.xlu1 %v630_v52  ;;  %634 = vadd.xlane.f32.xlu0 %v633_v54  ;;  %v4722_v55 = vpop.permute.xlu0 %924 }
 0x2d7   :  { %4076 = vmatprep.subr.mxu1 %v4722_v55 }
 0x2d8   :  { %v4725_v56 = vpop.eup %4306 }
 0x2d9   :  { %v627_v57 = vsel %vm572_vm2, %v4725_v56, 0.0 }
 0x2da   :  { %628 = vadd.xlane.f32.xlu1 %v627_v57  ;;  %v923_v6 = vpop.permute.xlu0 %922 }
 0x2dc   :  { %v4729_v58 = vpop.eup %4308 }
 0x2dd   :  { %v642_v59 = vsel %vm572_vm2, %v4729_v58, 0.0 }
 0x2de   :  { %643 = vadd.xlane.f32.xlu0 %v642_v59  ;;  %v4758_v7 = vpop.permute.xlu0 %1117 }
 0x2eb   :  { %1299 = vrot.lane.b32.xlu1 %v4603_v26, %s4476_s17 }
 0x2f4   :  { %1206 = vrot.lane.b32.xlu0 %v4591_v22, %s4476_s17 }
 0x2f8   :  { %1113 = vrot.lane.b32.xlu0 %v4587_v20, %s4477_s5 }
 0x2fc   :  { %1204 = vrot.lane.b32.xlu0 %v4597_v24, %s4477_s5 }
 0x300   :  { %1293 = vrot.lane.b32.xlu0 %v4606_v28, %s4477_s5 }
 0x306   :  { %v593_v1 = vpop.xlane.xlu1 %592 }
 0x307   :  { %v603_v2 = vsub.f32 %v4693_v8, %v593_v1  ;;  %v4760_v8 = vpop.permute.xlu0 %1115 }
 0x309   :  { %v617_v3 = vmul.f32 1.442695, %v603_v2 }
 0x30a   :  { %v4762_v10 = vpop.permute.xlu1 %1111 }
 0x30b   :  { %4310 = vpow2.f32 %v617_v3  ;;  %v1023_v9 = vpop.permute.xlu0 %1022 }
 0x318   :  { %v4746_v4 = vpop.eup %4310 }
 0x319   :  { %v639_v5 = vsel %vm572_vm2, %v4746_v4, 0.0 }
 0x31a   :  { %640 = vadd.xlane.f32.xlu1 %v639_v5 }
 0x32b   :  { %1202 = vrot.lane.b32.xlu1 %v4591_v22, %s4477_s5 }
 0x32f   :  { %1297 = vrot.lane.b32.xlu1 %v4606_v28, %s4476_s17 }
 0x333   :  { %1295 = vrot.lane.b32.xlu1 %v4603_v26, %s4477_s5 }
 0x337   :  { %1482 = vrot.lane.b32.xlu1 %v4582_v14, %s4478_s18 }
 0x34e   :  { %v626_v11 = vpop.xlane.xlu0 %625 }
 0x34f   :  { %4312 = vrcp.f32 %v626_v11 }
 0x357   :  { %v638_v12 = vpop.xlane.xlu0 %637 }
 0x35b   :  { %v623_v13 = vpop.xlane.xlu1 %622 }
 0x35c   :  { %4314 = vrcp.f32 %v623_v13  ;;  %v4313_v19 = vpop.eup %4312 }
 0x35d   :  { %4316 = vrcp.f32 %v638_v12  ;;  %v654_v27 = vmul.f32 %v4313_v19, %v4699_v32 }
 0x35f   :  { %v632_v15 = vpop.xlane.xlu1 %631  ;;  %v635_v16 = vpop.xlane.xlu0 %634 }
 0x360   :  { %4318 = vrcp.f32 %v635_v16 }
 0x361   :  { %4320 = vrcp.f32 %v632_v15 }
 0x363   :  { %v629_v18 = vpop.xlane.xlu1 %628 }
 0x364   :  { %4322 = vrcp.f32 %v629_v18 }
 0x367   :  { %v644_v37 = vpop.xlane.xlu0 %643  ;;  %v1300_v39 = vpop.permute.xlu1 %1299 }
 0x368   :  { %4324 = vrcp.f32 %v644_v37 }
 0x369   :  { %v4315_v21 = vpop.eup %4314 }
 0x36a   :  { %v653_v25 = vmul.f32 %v4315_v21, %v4707_v46  ;;  %v4317_v29 = vpop.eup %4316 }
 0x36b   :  { %v658_v34 = vmul.f32 %v4317_v29, %v4703_v42  ;;  %v1207_v38 = vpop.permute.xlu0 %1206 }
 0x36c   :  { %4059 = vmatprep.mubr.msk.f32.mxu0 %vm572_vm2, %v653_v25 }
 0x36d   :  { %4060 = vmatmul.mubr.msk.f32.vlgmr.msra.gmra.mxu0 %vm572_vm2, %v654_v27  ;;  %v4319_v30 = vpop.eup %4318 }
 0x36e   :  { %4070 = vmatpush3.msra.mxu0 %v4709_v47  ;;  %v657_v31 = vmul.f32 %v4319_v30, %v4716_v51  ;;  %v4321_v33 = vpop.eup %4320 }
 0x36f   :  { %4071 = vmatprep.subr.mxu0 %v836_v60  ;;  %v656_v36 = vmul.f32 %v4321_v33, %v4714_v49  ;;  %v1114_v41 = vpop.permute.xlu0 %1113 }
 0x370   :  { %4072 = vmatpush3.msra.mxu0 %v836_v60  ;;  %4073 = vmatprep.mubr.msk.f32.mxu0 %vm572_vm2, %v657_v31  ;;  %v3769_v60 = vld [vmem:[%s5397_s3 + $0x18] sm:$0xff] }
 0x371   :  { %v4323_v35 = vpop.eup %4322  ;;  %4083 = vmatprep.subr.msk.mxu0 %vm213_vm1, %v1027_v61  ;;  %4074 = vmatmul.mubr.msk.f32.vlgmr.msra.gmra.mxu0 %vm572_vm2, %v658_v34 }
 0x372   :  { %v655_v32 = vmul.f32 %v4323_v35, %v4725_v56  ;;  %4084 = vmatpush3.xpose.msk.msra.mxu0 %vm213_vm1, %v1027_v61  ;;  %4087 = vmatprep.mubr.msk.f32.mxu0 %vm213_vm1, %v1021_v63 }
 0x373   :  { %4085 = vmatprep.subr.msk.mxu0 %vm213_vm1, %v1025_v62  ;;  %v1205_v44 = vpop.permute.xlu0 %1204 }
 0x374   :  { %4066 = vmatprep.mubr.msk.f32.mxu1 %vm572_vm2, %v655_v32 }
 0x375   :  { %4067 = vmatmul.mubr.msk.f32.vlgmr.msra.gmra.mxu1 %vm572_vm2, %v656_v36  ;;  %v4325_v47 = vpop.eup %4324 }
 0x376   :  { %4077 = vmatpush3.msra.mxu1 %v4722_v55  ;;  %4086 = vmatpush3.xpose.msk.msra.mxu0 %vm213_vm1, %v1025_v62  ;;  %v660_v51 = vmul.f32 %v4325_v47, %v4729_v58  ;;  %v3768_v62 = vld [vmem:[%s5397_s3 + $0x10] sm:$0xff] }
 0x377   :  { %4078 = vmatprep.subr.mxu1 %v923_v6  ;;  %4097 = vmatprep.subr.msk.mxu0 %vm213_vm1, %v4743_v0  ;;  %v1294_v52 = vpop.permute.xlu0 %1293 }
 0x378   :  { %4079 = vmatpush3.msra.mxu1 %v923_v6 }
 0x379   :  { %4090 = vmatprep.subr.msk.mxu1 %vm213_vm1, %v4758_v7  ;;  %4088 = vmatmul.mubr.msk.f32.vlgmr.msra.gmra.mxu0 %vm213_vm1, %v1023_v9 }
 0x37a   :  { %4098 = vmatpush3.xpose.msk.msra.mxu0 %vm213_vm1, %v4743_v0 }
 0x37b   :  { %4099 = vmatprep.subr.msk.mxu0 %vm213_vm1, %v1207_v38 }
 0x37e   :  { %4100 = vmatpush3.xpose.msk.msra.mxu0 %vm213_vm1, %v1207_v38 }
 0x3a3   :  { %v641_v42 = vpop.xlane.xlu1 %640 }
 0x3a4   :  { %4326 = vrcp.f32 %v641_v42 }
 0x3a7   :  { %v1203_v43 = vpop.permute.xlu1 %1202 }
 0x3a8   :  { %4101 = vmatprep.mubr.msk.f32.mxu0 %vm213_vm1, %v1203_v43 }
 0x3a9   :  { %4102 = vmatmul.mubr.msk.f32.vlgmr.msra.gmra.mxu0 %vm213_vm1, %v1205_v44 }
 0x3ab   :  { %v1298_v45 = vpop.permute.xlu1 %1297 }
 0x3af   :  { %v1296_v46 = vpop.permute.xlu1 %1295 }
 0x3b1   :  { %v4327_v48 = vpop.eup %4326 }
 0x3b2   :  { %v659_v49 = vmul.f32 %v4327_v48, %v4746_v4 }
 0x3b3   :  { %v1483_v50 = vpop.permute.xlu1 %1482 }
 0x3b4   :  { %4080 = vmatprep.mubr.msk.f32.mxu1 %vm572_vm2, %v659_v49  ;;  %4111 = vmatprep.subr.mxu0 %v1483_v50 }
 0x3b5   :  { %4081 = vmatmul.mubr.msk.f32.vlgmr.msra.gmra.mxu1 %vm572_vm2, %v660_v51  ;;  %4112 = vmatpush3.msra.mxu0 %v1483_v50 }
 0x3b6   :  { %4091 = vmatpush3.xpose.msk.msra.mxu1 %vm213_vm1, %v4758_v7  ;;  %4094 = vmatprep.mubr.msk.f32.mxu1 %vm213_vm1, %v4762_v10 }
 0x3b7   :  { %4092 = vmatprep.subr.msk.mxu1 %vm213_vm1, %v4760_v8 }
 0x3ba   :  { %4093 = vmatpush3.xpose.msk.msra.mxu1 %vm213_vm1, %v4760_v8 }
 0x3bb   :  { %4104 = vmatprep.subr.msk.mxu1 %vm213_vm1, %v1300_v39 }
 0x3bd   :  { %4095 = vmatmul.mubr.msk.f32.vlgmr.msra.gmra.mxu1 %vm213_vm1, %v1114_v41 }
 0x3be   :  { %4105 = vmatpush3.xpose.msk.msra.mxu1 %vm213_vm1, %v1300_v39  ;;  %4108 = vmatprep.mubr.msk.f32.mxu1 %vm213_vm1, %v1294_v52 }
 0x3bf   :  { %4106 = vmatprep.subr.msk.mxu1 %vm213_vm1, %v1298_v45 }
 0x3c2   :  { %4107 = vmatpush3.xpose.msk.msra.mxu1 %vm213_vm1, %v1298_v45 }
 0x3c5   :  { %4109 = vmatmul.mubr.msk.f32.vlgmr.msra.gmra.mxu1 %vm213_vm1, %v1296_v46 }
 0x42d   :  { %v4061_v54 = vpop.f32.mrf.mxu0 }
 0x42e   :  { %1010 = vst.msk [vmem:[#allocation2 + $0x8] sm:$0xff] %vm213_vm1, %v4061_v54 }
 0x42f   :  { %v739_v55 = vpop.f32.mrf.mxu0 }
 0x430   :  { %1009 = vst.msk [vmem:[#allocation2] sm:$0xff] %vm213_vm1, %v739_v55 }
 0x431   :  { %v4075_v56 = vpop.f32.mrf.mxu0 }
 0x432   :  { %1014 = vst.msk [vmem:[#allocation2 + $0x28] sm:$0xff] %vm213_vm1, %v4075_v56 }
 0x433   :  { %v913_v57 = vpop.f32.mrf.mxu0 }
 0x434   :  { %1013 = vst.msk [vmem:[#allocation2 + $0x20] sm:$0xff] %vm213_vm1, %v913_v57 }
 0x435   :  { %v4068_v58 = vpop.f32.mrf.mxu1 }
 0x436   :  { %1012 = vst.msk [vmem:[#allocation2 + $0x18] sm:$0xff] %vm213_vm1, %v4068_v58 }
 0x437   :  { %v826_v59 = vpop.f32.mrf.mxu1 }
 0x438   :  { %1011 = vst.msk [vmem:[#allocation2 + $0x10] sm:$0xff] %vm213_vm1, %v826_v59 }
 0x439   :  { %v4089_v61 = vpop.f32.mrf.mxu0 }
 0x43a   :  { %v1108_v63 = vadd.f32 %v4089_v61, %v3769_v60 }
 0x43b   :  { %v1102_v0 = vpop.f32.mrf.mxu0 }
 0x43c   :  { %v1103_v1 = vadd.f32 %v3768_v62, %v1102_v0  ;;  %v1385_v2 = vadd.f32 %v1108_v63, %v4643_v40 }
 0x43e   :  { %v1395_v3 = vsel %vm572_vm2, %v1385_v2, -inf  ;;  %v4828_v4 = vadd.f32 %v1103_v1, %v4651_v53 }
 0x43f   :  { %1396 = vmax.xlane.f32.xlu1 %v1395_v3 }
 0x440   :  { %v1392_v5 = vsel %vm572_vm2, %v4828_v4, -inf }
 0x441   :  { %1393 = vmax.xlane.f32.xlu0 %v1392_v5 }
 0x469   :  { %v4103_v6 = vpop.f32.mrf.mxu0 }
 0x46a   :  { %v1290_v7 = vadd.f32 %v4103_v6, %v3769_v60 }
 0x46b   :  { %v1284_v8 = vpop.f32.mrf.mxu0 }
 0x46c   :  { %v1285_v9 = vadd.f32 %v3768_v62, %v1284_v8  ;;  %v1389_v10 = vadd.f32 %v1290_v7, %v4643_v40 }
 0x46e   :  { %v1407_v11 = vsel %vm572_vm2, %v1389_v10, -inf  ;;  %v1388_v12 = vadd.f32 %v1285_v9, %v4651_v53 }
 0x46f   :  { %1408 = vmax.xlane.f32.xlu0 %v1407_v11 }
 0x470   :  { %v1404_v13 = vsel %vm572_vm2, %v1388_v12, -inf }
 0x473   :  { %1405 = vmax.xlane.f32.xlu0 %v1404_v13 }
 0x475   :  { %v4082_v15 = vpop.f32.mrf.mxu1 }
 0x476   :  { %1016 = vst.msk [vmem:[#allocation2 + $0x38] sm:$0xff] %vm213_vm1, %v4082_v15 }
 0x477   :  { %v1000_v16 = vpop.f32.mrf.mxu1 }
 0x478   :  { %1015 = vst.msk [vmem:[#allocation2 + $0x30] sm:$0xff] %vm213_vm1, %v1000_v16 }
 0x47d   :  { %v4096_v18 = vpop.f32.mrf.mxu1 }
 0x47e   :  { %v1199_v19 = vadd.f32 %v4096_v18, %v3769_v60 }
 0x47f   :  { %v1193_v21 = vpop.f32.mrf.mxu1 }
 0x480   :  { %v1194_v25 = vadd.f32 %v3768_v62, %v1193_v21  ;;  %v1387_v27 = vadd.f32 %v1199_v19, %v4643_v40 }
 0x482   :  { %v1401_v29 = vsel %vm572_vm2, %v1387_v27, -inf  ;;  %v4841_v30 = vadd.f32 %v1194_v25, %v4651_v53 }
 0x483   :  { %1402 = vmax.xlane.f32.xlu1 %v1401_v29 }
 0x484   :  { %v1398_v31 = vsel %vm572_vm2, %v4841_v30, -inf }
 0x485   :  { %1399 = vmax.xlane.f32.xlu0 %v1398_v31  ;;  %v4110_v33 = vpop.f32.mrf.mxu1 }
 0x486   :  { %v1381_v34 = vadd.f32 %v4110_v33, %v3769_v60 }
 0x487   :  { %v1375_v36 = vpop.f32.mrf.mxu1 }
 0x488   :  { %v4846_v35 = vadd.f32 %v1381_v34, %v4643_v40  ;;  %v1376_v37 = vadd.f32 %v3768_v62, %v1375_v36 }
 0x48a   :  { %v1413_v32 = vsel %vm572_vm2, %v4846_v35, -inf  ;;  %v4879_v41 = vadd.f32 %v1376_v37, %v4651_v53 }
 0x48b   :  { %1414 = vmax.xlane.f32.xlu0 %v1413_v32 }
 0x48c   :  { %v1410_v43 = vsel %vm572_vm2, %v4879_v41, -inf }
 0x494   :  { %1569 = vrot.lane.b32.xlu1 %v4587_v20, %s4478_s18 }
 0x498   :  { %1656 = vrot.lane.b32.xlu1 %v4597_v24, %s4478_s18 }
 0x49c   :  { %1654 = vrot.lane.b32.xlu1 %v4591_v22, %s4478_s18 }
 0x4a0   :  { %1878 = vrot.lane.b32.xlu1 %v4582_v14, %s4479_s23 }
 0x4a1   :  { %1480 = vrot.lane.b32.xlu0 %v4584_v17, %s4478_s18 }
 0x4a4   :  { %1876 = vrot.lane.b32.xlu1 %v4584_v17, %s4479_s23 }
 0x4a5   :  { %1567 = vrot.lane.b32.xlu0 %v4595_v23, %s4478_s18 }
 0x4a8   :  { %1872 = vrot.lane.b32.xlu1 %v4584_v17, %s4480_s24 }
 0x4a9   :  { %1743 = vrot.lane.b32.xlu0 %v4603_v26, %s4478_s18 }
 0x4ac   :  { %2060 = vrot.lane.b32.xlu1 %v4597_v24, %s4479_s23 }
 0x4ad   :  { %1741 = vrot.lane.b32.xlu0 %v4606_v28, %s4478_s18 }
 0x4b1   :  { %1969 = vrot.lane.b32.xlu0 %v4587_v20, %s4479_s23 }
 0x4b5   :  { %1967 = vrot.lane.b32.xlu0 %v4595_v23, %s4479_s23 }
 0x4b9   :  { %1874 = vrot.lane.b32.xlu0 %v4582_v14, %s4480_s24 }
 0x4c8   :  { %v1397_v38 = vpop.xlane.xlu1 %1396 }
 0x4c9   :  { %v1417_v39 = vsub.f32 %v1385_v2, %v1397_v38 }
 0x4ca   :  { %v1394_v46 = vpop.xlane.xlu0 %1393 }
 0x4cb   :  { %v1426_v42 = vmul.f32 1.442695, %v1417_v39  ;;  %v1416_v47 = vsub.f32 %v4828_v4, %v1394_v46 }
 0x4cd   :  { %4328 = vpow2.f32 %v1426_v42  ;;  %v1424_v48 = vmul.f32 1.442695, %v1416_v47 }
 0x4cf   :  { %4330 = vpow2.f32 %v1424_v48 }
 0x4d0   :  { %1411 = vmax.xlane.f32.xlu1 %v1410_v43 }
 0x4da   :  { %v4883_v44 = vpop.eup %4328 }
 0x4db   :  { %v1443_v45 = vsel %vm572_vm2, %v4883_v44, 0.0 }
 0x4dc   :  { %1444 = vadd.xlane.f32.xlu0 %v1443_v45  ;;  %v4890_v56 = vpop.eup %4330 }
 0x4dd   :  { %v1440_v57 = vsel %vm572_vm2, %v4890_v56, 0.0 }
 0x4e1   :  { %1963 = vrot.lane.b32.xlu1 %v4595_v23, %s4480_s24 }
 0x4f8   :  { %v1409_v49 = vpop.xlane.xlu0 %1408 }
 0x4f9   :  { %v1421_v50 = vsub.f32 %v1389_v10, %v1409_v49 }
 0x4fb   :  { %v1434_v51 = vmul.f32 1.442695, %v1421_v50 }
 0x4fc   :  { %v1406_v52 = vpop.xlane.xlu0 %1405 }
 0x4fd   :  { %4332 = vpow2.f32 %v1434_v51  ;;  %v1420_v54 = vsub.f32 %v1388_v12, %v1406_v52 }
 0x4ff   :  { %v1432_v55 = vmul.f32 1.442695, %v1420_v54 }
 0x501   :  { %4334 = vpow2.f32 %v1432_v55 }
 0x505   :  { %1441 = vadd.xlane.f32.xlu1 %v1440_v57 }
 0x50a   :  { %v4894_v58 = vpop.eup %4332 }
 0x50b   :  { %v1455_v59 = vsel %vm572_vm2, %v4894_v58, 0.0 }
 0x50c   :  { %v1403_v60 = vpop.xlane.xlu1 %1402  ;;  %1456 = vadd.xlane.f32.xlu0 %v1455_v59 }
 0x50d   :  { %v1419_v61 = vsub.f32 %v1387_v27, %v1403_v60 }
 0x50e   :  { %v4898_v62 = vpop.eup %4334  ;;  %v1400_v63 = vpop.xlane.xlu0 %1399 }
 0x50f   :  { %v1430_v0 = vmul.f32 1.442695, %v1419_v61  ;;  %v1418_v1 = vsub.f32 %v4841_v30, %v1400_v63  ;;  %v1452_v2 = vsel %vm572_vm2, %v4898_v62, 0.0 }
 0x510   :  { %v1570_v3 = vpop.permute.xlu1 %1569  ;;  %1453 = vadd.xlane.f32.xlu0 %v1452_v2 }
 0x511   :  { %4336 = vpow2.f32 %v1430_v0  ;;  %v1428_v4 = vmul.f32 1.442695, %v1418_v1  ;;  %4118 = vmatprep.subr.mxu1 %v1570_v3 }
 0x512   :  { %4119 = vmatpush3.msra.mxu1 %v1570_v3 }
 0x513   :  { %4338 = vpow2.f32 %v1428_v4 }
 0x514   :  { %v1415_v5 = vpop.xlane.xlu0 %1414  ;;  %v1657_v9 = vpop.permute.xlu1 %1656 }
 0x515   :  { %v1423_v6 = vsub.f32 %v4846_v35, %v1415_v5 }
 0x517   :  { %v1438_v7 = vmul.f32 1.442695, %v1423_v6 }
 0x518   :  { %v1481_v8 = vpop.permute.xlu0 %1480  ;;  %v1655_v21 = vpop.permute.xlu1 %1654 }
 0x519   :  { %4340 = vpow2.f32 %v1438_v7  ;;  %4113 = vmatprep.subr.mxu0 %v1481_v8 }
 0x51a   :  { %4114 = vmatpush3.msra.mxu0 %v1481_v8 }
 0x51b   :  { %4125 = vmatprep.subr.mxu0 %v1657_v9 }
 0x51c   :  { %v1568_v10 = vpop.permute.xlu0 %1567  ;;  %v1879_v25 = vpop.permute.xlu1 %1878 }
 0x51d   :  { %4120 = vmatprep.subr.mxu1 %v1568_v10 }
 0x51e   :  { %v4904_v11 = vpop.eup %4336  ;;  %4121 = vmatpush3.msra.mxu1 %v1568_v10 }
 0x51f   :  { %v1449_v12 = vsel %vm572_vm2, %v4904_v11, 0.0 }
 0x520   :  { %v4908_v13 = vpop.eup %4338  ;;  %1450 = vadd.xlane.f32.xlu1 %v1449_v12  ;;  %v4910_v15 = vpop.permute.xlu0 %1743 }
 0x521   :  { %4132 = vmatprep.subr.mxu1 %v4910_v15  ;;  %v1446_v16 = vsel %vm572_vm2, %v4908_v13, 0.0  ;;  %v1877_v27 = vpop.permute.xlu1 %1876 }
 0x524   :  { %1447 = vadd.xlane.f32.xlu1 %v1446_v16  ;;  %v1742_v36 = vpop.permute.xlu0 %1741 }
 0x525   :  { %v1873_v29 = vpop.permute.xlu1 %1872 }
 0x526   :  { %v4915_v18 = vpop.eup %4340 }
 0x527   :  { %v1461_v19 = vsel %vm572_vm2, %v4915_v18, 0.0 }
 0x528   :  { %1462 = vadd.xlane.f32.xlu0 %v1461_v19  ;;  %v4934_v37 = vpop.permute.xlu0 %1969 }
 0x529   :  { %v2061_v30 = vpop.permute.xlu1 %2060 }
 0x52c   :  { %v4938_v38 = vpop.permute.xlu0 %1967 }
 0x530   :  { %v1875_v39 = vpop.permute.xlu0 %1874 }
 0x535   :  { %2151 = vrot.lane.b32.xlu1 %v4603_v26, %s4479_s23 }
 0x53e   :  { %2058 = vrot.lane.b32.xlu0 %v4591_v22, %s4479_s23 }
 0x542   :  { %1965 = vrot.lane.b32.xlu0 %v4587_v20, %s4480_s24 }
 0x546   :  { %2056 = vrot.lane.b32.xlu0 %v4597_v24, %s4480_s24 }
 0x54a   :  { %2145 = vrot.lane.b32.xlu0 %v4606_v28, %s4480_s24 }
 0x559   :  { %v1412_v31 = vpop.xlane.xlu1 %1411 }
 0x55a   :  { %v1422_v33 = vsub.f32 %v4879_v41, %v1412_v31 }
 0x55c   :  { %v1436_v34 = vmul.f32 1.442695, %v1422_v33 }
 0x55d   :  { %v4944_v41 = vpop.permute.xlu1 %1963 }
 0x55e   :  { %4342 = vpow2.f32 %v1436_v34 }
 0x565   :  { %v1445_v42 = vpop.xlane.xlu0 %1444 }
 0x566   :  { %4344 = vrcp.f32 %v1445_v42 }
 0x56b   :  { %v4930_v35 = vpop.eup %4342 }
 0x56c   :  { %v1458_v32 = vsel %vm572_vm2, %v4930_v35, 0.0 }
 0x56d   :  { %1459 = vadd.xlane.f32.xlu1 %v1458_v32 }
 0x573   :  { %v4345_v47 = vpop.eup %4344 }
 0x574   :  { %v1473_v50 = vmul.f32 %v4345_v47, %v4883_v44 }
 0x57e   :  { %2054 = vrot.lane.b32.xlu1 %v4591_v22, %s4480_s24 }
 0x582   :  { %2149 = vrot.lane.b32.xlu1 %v4606_v28, %s4479_s23 }
 0x586   :  { %2147 = vrot.lane.b32.xlu1 %v4603_v26, %s4480_s24 }
 0x58a   :  { %2334 = vrot.lane.b32.xlu1 %v4582_v14, %s4481_s25 }
 0x58e   :  { %v1442_v43 = vpop.xlane.xlu1 %1441 }
 0x58f   :  { %4346 = vrcp.f32 %v1442_v43 }
 0x595   :  { %v1457_v45 = vpop.xlane.xlu0 %1456 }
 0x596   :  { %4348 = vrcp.f32 %v1457_v45 }
 0x599   :  { %v1454_v46 = vpop.xlane.xlu0 %1453 }
 0x59a   :  { %4350 = vrcp.f32 %v1454_v46 }
 0x59c   :  { %v4347_v48 = vpop.eup %4346 }
 0x59d   :  { %v1472_v49 = vmul.f32 %v4347_v48, %v4890_v56 }
 0x59f   :  { %4115 = vmatprep.mubr.msk.f32.mxu0 %vm572_vm2, %v1472_v49 }
 0x5a0   :  { %4116 = vmatmul.mubr.msk.f32.vlgmr.msra.gmra.mxu0 %vm572_vm2, %v1473_v50 }
 0x5a1   :  { %4126 = vmatpush3.msra.mxu0 %v1657_v9 }
 0x5a2   :  { %4127 = vmatprep.subr.mxu0 %v1655_v21 }
 0x5a3   :  { %4128 = vmatpush3.msra.mxu0 %v1655_v21  ;;  %v4349_v51 = vpop.eup %4348  ;;  %v3794_v21 = vld [vmem:[%s5397_s3 + $0x20] sm:$0xff] }
 0x5a4   :  { %4139 = vmatprep.subr.msk.mxu0 %vm213_vm1, %v1879_v25  ;;  %v1477_v57 = vmul.f32 %v4349_v51, %v4894_v58 }
 0x5a7   :  { %v4351_v52 = vpop.eup %4350 }
 0x5a8   :  { %v1476_v54 = vmul.f32 %v4351_v52, %v4898_v62 }
 0x5a9   :  { %v1451_v55 = vpop.xlane.xlu1 %1450 }
 0x5aa   :  { %4129 = vmatprep.mubr.msk.f32.mxu0 %vm572_vm2, %v1476_v54  ;;  %4352 = vrcp.f32 %v1451_v55 }
 0x5ab   :  { %4130 = vmatmul.mubr.msk.f32.vlgmr.msra.gmra.mxu0 %vm572_vm2, %v1477_v57 }
 0x5ac   :  { %4140 = vmatpush3.xpose.msk.msra.mxu0 %vm213_vm1, %v1879_v25  ;;  %4143 = vmatprep.mubr.msk.f32.mxu0 %vm213_vm1, %v1873_v29 }
 0x5ad   :  { %v1448_v44 = vpop.xlane.xlu1 %1447  ;;  %4141 = vmatprep.subr.msk.mxu0 %vm213_vm1, %v1877_v27 }
 0x5ae   :  { %4354 = vrcp.f32 %v1448_v44 }
 0x5b0   :  { %4142 = vmatpush3.xpose.msk.msra.mxu0 %vm213_vm1, %v1877_v27 }
 0x5b1   :  { %4153 = vmatprep.subr.msk.mxu0 %vm213_vm1, %v2061_v30  ;;  %v1463_v56 = vpop.xlane.xlu0 %1462  ;;  %v2152_v63 = vpop.permute.xlu1 %2151 }
 0x5b2   :  { %4356 = vrcp.f32 %v1463_v56 }
 0x5b3   :  { %4144 = vmatmul.mubr.msk.f32.vlgmr.msra.gmra.mxu0 %vm213_vm1, %v1875_v39 }
 0x5b4   :  { %4154 = vmatpush3.xpose.msk.msra.mxu0 %vm213_vm1, %v2061_v30 }
 0x5b5   :  { %v2059_v58 = vpop.permute.xlu0 %2058 }
 0x5b6   :  { %4155 = vmatprep.subr.msk.mxu0 %vm213_vm1, %v2059_v58 }
 0x5b7   :  { %v4353_v59 = vpop.eup %4352 }
 0x5b8   :  { %4156 = vmatpush3.xpose.msk.msra.mxu0 %vm213_vm1, %v2059_v58  ;;  %v1475_v62 = vmul.f32 %v4353_v59, %v4904_v11  ;;  %v5040_v58 = vld [vmem:[#allocation3 + $0x8] sm:$0xff] }
 0x5b9   :  { %v1966_v0 = vpop.permute.xlu0 %1965 }
 0x5bb   :  { %v4355_v60 = vpop.eup %4354 }
 0x5bc   :  { %v1474_v61 = vmul.f32 %v4355_v60, %v4908_v13 }
 0x5bd   :  { %v2057_v3 = vpop.permute.xlu0 %2056 }
 0x5be   :  { %4122 = vmatprep.mubr.msk.f32.mxu1 %vm572_vm2, %v1474_v61 }
 0x5bf   :  { %4123 = vmatmul.mubr.msk.f32.vlgmr.msra.gmra.mxu1 %vm572_vm2, %v1475_v62  ;;  %v4357_v6 = vpop.eup %4356 }
 0x5c0   :  { %4133 = vmatpush3.msra.mxu1 %v4910_v15  ;;  %v1479_v10 = vmul.f32 %v4357_v6, %v4915_v18  ;;  %v3795_v18 = vld [vmem:[%s5397_s3 + $0x28] sm:$0xff] }
 0x5c1   :  { %4134 = vmatprep.subr.mxu1 %v1742_v36  ;;  %v2146_v11 = vpop.permute.xlu0 %2145 }
 0x5c2   :  { %4135 = vmatpush3.msra.mxu1 %v1742_v36 }
 0x5c3   :  { %4146 = vmatprep.subr.msk.mxu1 %vm213_vm1, %v4934_v37 }
 0x5f6   :  { %v1460_v1 = vpop.xlane.xlu1 %1459 }
 0x5f7   :  { %4358 = vrcp.f32 %v1460_v1 }
 0x5fa   :  { %v2055_v2 = vpop.permute.xlu1 %2054 }
 0x5fb   :  { %4157 = vmatprep.mubr.msk.f32.mxu0 %vm213_vm1, %v2055_v2 }
 0x5fc   :  { %4158 = vmatmul.mubr.msk.f32.vlgmr.msra.gmra.mxu0 %vm213_vm1, %v2057_v3 }
 0x5fe   :  { %v2150_v4 = vpop.permute.xlu1 %2149 }
 0x602   :  { %v2148_v5 = vpop.permute.xlu1 %2147 }
 0x604   :  { %v4359_v7 = vpop.eup %4358 }
 0x605   :  { %v1478_v8 = vmul.f32 %v4359_v7, %v4930_v35 }
 0x606   :  { %v2335_v9 = vpop.permute.xlu1 %2334 }
 0x607   :  { %4136 = vmatprep.mubr.msk.f32.mxu1 %vm572_vm2, %v1478_v8  ;;  %4167 = vmatprep.subr.mxu0 %v2335_v9 }
 0x608   :  { %4137 = vmatmul.mubr.msk.f32.vlgmr.msra.gmra.mxu1 %vm572_vm2, %v1479_v10  ;;  %4168 = vmatpush3.msra.mxu0 %v2335_v9 }
 0x609   :  { %4147 = vmatpush3.xpose.msk.msra.mxu1 %vm213_vm1, %v4934_v37  ;;  %4150 = vmatprep.mubr.msk.f32.mxu1 %vm213_vm1, %v4944_v41 }
 0x60a   :  { %4148 = vmatprep.subr.msk.mxu1 %vm213_vm1, %v4938_v38 }
 0x60d   :  { %4149 = vmatpush3.xpose.msk.msra.mxu1 %vm213_vm1, %v4938_v38 }
 0x60e   :  { %4160 = vmatprep.subr.msk.mxu1 %vm213_vm1, %v2152_v63 }
 0x610   :  { %4151 = vmatmul.mubr.msk.f32.vlgmr.msra.gmra.mxu1 %vm213_vm1, %v1966_v0  ;;  %v5075_v0 = vld [vmem:[#allocation3] sm:$0xff] }
 0x611   :  { %4161 = vmatpush3.xpose.msk.msra.mxu1 %vm213_vm1, %v2152_v63  ;;  %4164 = vmatprep.mubr.msk.f32.mxu1 %vm213_vm1, %v2146_v11 }
 0x612   :  { %4162 = vmatprep.subr.msk.mxu1 %vm213_vm1, %v2150_v4 }
 0x615   :  { %4163 = vmatpush3.xpose.msk.msra.mxu1 %vm213_vm1, %v2150_v4 }
 0x618   :  { %4165 = vmatmul.mubr.msk.f32.vlgmr.msra.gmra.mxu1 %vm213_vm1, %v2148_v5 }
 0x660   :  { %v4994_v12 = vpop.f32.mrf.mxu0 }
 0x662   :  { %v4996_v13 = vpop.f32.mrf.mxu0 }
 0x66b   :  { %v4998_v15 = vpop.f32.mrf.mxu0 }
 0x66d   :  { %v5000_v16 = vpop.f32.mrf.mxu0 }
 0x673   :  { %v4145_v19 = vpop.f32.mrf.mxu0 }
 0x674   :  { %v1960_v25 = vadd.f32 %v4145_v19, %v3795_v18 }
 0x675   :  { %v1954_v27 = vpop.f32.mrf.mxu0 }
 0x676   :  { %v1955_v29 = vadd.f32 %v3794_v21, %v1954_v27  ;;  %v2237_v30 = vadd.f32 %v1960_v25, %v4643_v40 }
 0x678   :  { %v2247_v31 = vsel %vm572_vm2, %v2237_v30, -inf  ;;  %v5011_v33 = vadd.f32 %v1955_v29, %v4651_v53 }
 0x679   :  { %2248 = vmax.xlane.f32.xlu1 %v2247_v31 }
 0x67a   :  { %v2244_v34 = vsel %vm572_vm2, %v5011_v33, -inf }
 0x67b   :  { %2245 = vmax.xlane.f32.xlu0 %v2244_v34 }
 0x67f   :  { %v5020_v42 = vpop.f32.mrf.mxu1 }
 0x681   :  { %v5024_v45 = vpop.f32.mrf.mxu1 }
 0x6bc   :  { %v4159_v35 = vpop.f32.mrf.mxu0 }
 0x6bd   :  { %v2142_v32 = vadd.f32 %v4159_v35, %v3795_v18 }
 0x6be   :  { %v2136_v36 = vpop.f32.mrf.mxu0 }
 0x6bf   :  { %v2137_v37 = vadd.f32 %v3794_v21, %v2136_v36  ;;  %v2241_v38 = vadd.f32 %v2142_v32, %v4643_v40 }
 0x6c1   :  { %v2259_v39 = vsel %vm572_vm2, %v2241_v38, -inf  ;;  %v5018_v41 = vadd.f32 %v2137_v37, %v4651_v53 }
 0x6c2   :  { %2260 = vmax.xlane.f32.xlu0 %v2259_v39 }
 0x6c3   :  { %v2256_v43 = vsel %vm572_vm2, %v5018_v41, -inf }
 0x6c6   :  { %2257 = vmax.xlane.f32.xlu0 %v2256_v43 }
 0x6c8   :  { %v5026_v46 = vpop.f32.mrf.mxu1 }
 0x6ca   :  { %v5028_v47 = vpop.f32.mrf.mxu1 }
 0x6d0   :  { %v4152_v48 = vpop.f32.mrf.mxu1 }
 0x6d1   :  { %v2051_v49 = vadd.f32 %v4152_v48, %v3795_v18 }
 0x6d2   :  { %v2045_v50 = vpop.f32.mrf.mxu1 }
 0x6d3   :  { %v2046_v51 = vadd.f32 %v3794_v21, %v2045_v50  ;;  %v5031_v52 = vadd.f32 %v2051_v49, %v4643_v40 }
 0x6d5   :  { %v2253_v54 = vsel %vm572_vm2, %v5031_v52, -inf  ;;  %v5036_v55 = vadd.f32 %v2046_v51, %v4651_v53 }
 0x6d6   :  { %2254 = vmax.xlane.f32.xlu1 %v2253_v54 }
 0x6d7   :  { %v2250_v57 = vsel %vm572_vm2, %v5036_v55, -inf }
 0x6d8   :  { %2251 = vmax.xlane.f32.xlu0 %v2250_v57  ;;  %v4166_v44 = vpop.f32.mrf.mxu1 }
 0x6d9   :  { %v2233_v56 = vadd.f32 %v4166_v44, %v3795_v18 }
 0x6da   :  { %v2227_v62 = vpop.f32.mrf.mxu1 }
 0x6db   :  { %v5043_v59 = vadd.f32 %v5040_v58, %v2233_v56  ;;  %v2228_v63 = vadd.f32 %v3794_v21, %v2227_v62 }
 0x6dd   :  { %v2265_v40 = vsel %vm572_vm2, %v5043_v59, -inf  ;;  %v5078_v1 = vadd.f32 %v5075_v0, %v2228_v63 }
 0x6de   :  { %2266 = vmax.xlane.f32.xlu0 %v2265_v40 }
 0x6df   :  { %v2262_v2 = vsel %vm572_vm2, %v5078_v1, -inf }
 0x6e7   :  { %2421 = vrot.lane.b32.xlu1 %v4587_v20, %s4481_s25 }
 0x6eb   :  { %2508 = vrot.lane.b32.xlu1 %v4597_v24, %s4481_s25 }
 0x6ef   :  { %2506 = vrot.lane.b32.xlu1 %v4591_v22, %s4481_s25 }
 0x6f3   :  { %2730 = vrot.lane.b32.xlu1 %v4582_v14, %s4482_s30 }
 0x6f4   :  { %2332 = vrot.lane.b32.xlu0 %v4584_v17, %s4481_s25 }
 0x6f7   :  { %2728 = vrot.lane.b32.xlu1 %v4584_v17, %s4482_s30 }
 0x6f8   :  { %2419 = vrot.lane.b32.xlu0 %v4595_v23, %s4481_s25 }
 0x6fb   :  { %2724 = vrot.lane.b32.xlu1 %v4584_v17, %s4483_s8 }
 0x6fc   :  { %2595 = vrot.lane.b32.xlu0 %v4603_v26, %s4481_s25 }
 0x6ff   :  { %2819 = vrot.lane.b32.xlu1 %v4595_v23, %s4482_s30 }
 0x700   :  { %2593 = vrot.lane.b32.xlu0 %v4606_v28, %s4481_s25 }
 0x702   :  { %v2249_v53 = vpop.xlane.xlu1 %2248 }
 0x703   :  { %v2269_v60 = vsub.f32 %v2237_v30, %v2249_v53 }
 0x704   :  { %2821 = vrot.lane.b32.xlu0 %v4587_v20, %s4482_s30  ;;  %v2246_v5 = vpop.xlane.xlu0 %2245 }
 0x705   :  { %v2278_v61 = vmul.f32 1.442695, %v2269_v60  ;;  %v2268_v6 = vsub.f32 %v5011_v33, %v2246_v5 }
 0x707   :  { %4360 = vpow2.f32 %v2278_v61  ;;  %v2276_v7 = vmul.f32 1.442695, %v2268_v6 }
 0x708   :  { %2726 = vrot.lane.b32.xlu0 %v4582_v14, %s4483_s8 }
 0x709   :  { %4362 = vpow2.f32 %v2276_v7 }
 0x70c   :  { %2912 = vrot.lane.b32.xlu0 %v4597_v24, %s4482_s30 }
 0x714   :  { %v5082_v3 = vpop.eup %4360 }
 0x715   :  { %v2295_v4 = vsel %vm572_vm2, %v5082_v3, 0.0 }
 0x716   :  { %v5090_v21 = vpop.eup %4362 }
 0x717   :  { %v2292_v25 = vsel %vm572_vm2, %v5090_v21, 0.0 }
 0x723   :  { %2263 = vmax.xlane.f32.xlu1 %v2262_v2 }
 0x72b   :  { %2296 = vadd.xlane.f32.xlu0 %v2295_v4 }
 0x734   :  { %2815 = vrot.lane.b32.xlu1 %v4595_v23, %s4483_s8 }
 0x74b   :  { %v2261_v8 = vpop.xlane.xlu0 %2260 }
 0x74c   :  { %v2273_v9 = vsub.f32 %v2241_v38, %v2261_v8 }
 0x74e   :  { %v2286_v10 = vmul.f32 1.442695, %v2273_v9 }
 0x74f   :  { %v2258_v11 = vpop.xlane.xlu0 %2257 }
 0x750   :  { %4364 = vpow2.f32 %v2286_v10  ;;  %v2272_v18 = vsub.f32 %v5018_v41, %v2258_v11 }
 0x752   :  { %v2284_v19 = vmul.f32 1.442695, %v2272_v18 }
 0x754   :  { %4366 = vpow2.f32 %v2284_v19 }
 0x758   :  { %2293 = vadd.xlane.f32.xlu1 %v2292_v25 }
 0x75d   :  { %v5094_v27 = vpop.eup %4364 }
 0x75e   :  { %v2307_v29 = vsel %vm572_vm2, %v5094_v27, 0.0 }
 0x75f   :  { %v2255_v30 = vpop.xlane.xlu1 %2254  ;;  %2308 = vadd.xlane.f32.xlu0 %v2307_v29 }
 0x760   :  { %v2271_v31 = vsub.f32 %v5031_v52, %v2255_v30 }
 0x761   :  { %v5099_v33 = vpop.eup %4366  ;;  %v2252_v34 = vpop.xlane.xlu0 %2251 }
 0x762   :  { %v2282_v35 = vmul.f32 1.442695, %v2271_v31  ;;  %v2270_v32 = vsub.f32 %v5036_v55, %v2252_v34  ;;  %v2304_v36 = vsel %vm572_vm2, %v5099_v33, 0.0 }
 0x763   :  { %v2422_v37 = vpop.permute.xlu1 %2421  ;;  %2305 = vadd.xlane.f32.xlu0 %v2304_v36 }
 0x764   :  { %4368 = vpow2.f32 %v2282_v35  ;;  %v2280_v38 = vmul.f32 1.442695, %v2270_v32  ;;  %4174 = vmatprep.subr.mxu1 %v2422_v37 }
 0x765   :  { %4175 = vmatpush3.msra.mxu1 %v2422_v37 }
 0x766   :  { %4370 = vpow2.f32 %v2280_v38 }
 0x767   :  { %v2267_v39 = vpop.xlane.xlu0 %2266  ;;  %v2509_v49 = vpop.permute.xlu1 %2508 }
 0x768   :  { %v2275_v41 = vsub.f32 %v5043_v59, %v2267_v39 }
 0x76a   :  { %v2290_v43 = vmul.f32 1.442695, %v2275_v41 }
 0x76b   :  { %v2333_v48 = vpop.permute.xlu0 %2332  ;;  %v2507_v59 = vpop.permute.xlu1 %2506 }
 0x76c   :  { %4372 = vpow2.f32 %v2290_v43  ;;  %4169 = vmatprep.subr.mxu0 %v2333_v48 }
 0x76d   :  { %4170 = vmatpush3.msra.mxu0 %v2333_v48 }
 0x76e   :  { %4181 = vmatprep.subr.mxu0 %v2509_v49 }
 0x76f   :  { %v2420_v50 = vpop.permute.xlu0 %2419  ;;  %v2731_v40 = vpop.permute.xlu1 %2730 }
 0x770   :  { %4176 = vmatprep.subr.mxu1 %v2420_v50 }
 0x771   :  { %v5105_v51 = vpop.eup %4368  ;;  %4177 = vmatpush3.msra.mxu1 %v2420_v50 }
 0x772   :  { %v2301_v52 = vsel %vm572_vm2, %v5105_v51, 0.0 }
 0x773   :  { %v5109_v54 = vpop.eup %4370  ;;  %2302 = vadd.xlane.f32.xlu1 %v2301_v52  ;;  %v5111_v55 = vpop.permute.xlu0 %2595 }
 0x774   :  { %4188 = vmatprep.subr.mxu1 %v5111_v55  ;;  %v2298_v57 = vsel %vm572_vm2, %v5109_v54, 0.0  ;;  %v2729_v53 = vpop.permute.xlu1 %2728 }
 0x777   :  { %2299 = vadd.xlane.f32.xlu1 %v2298_v57  ;;  %v2594_v6 = vpop.permute.xlu0 %2593 }
 0x778   :  { %v2725_v60 = vpop.permute.xlu1 %2724 }
 0x779   :  { %v5116_v44 = vpop.eup %4372 }
 0x77a   :  { %v2313_v56 = vsel %vm572_vm2, %v5116_v44, 0.0 }
 0x77b   :  { %2314 = vadd.xlane.f32.xlu0 %v2313_v56  ;;  %v5137_v7 = vpop.permute.xlu0 %2821 }
 0x77c   :  { %v5130_v61 = vpop.permute.xlu1 %2819 }
 0x77f   :  { %v2727_v8 = vpop.permute.xlu0 %2726 }
 0x788   :  { %2910 = vrot.lane.b32.xlu1 %v4591_v22, %s4482_s30 }
 0x791   :  { %2817 = vrot.lane.b32.xlu0 %v4587_v20, %s4483_s8 }
 0x795   :  { %3003 = vrot.lane.b32.xlu0 %v4603_v26, %s4482_s30 }
 0x799   :  { %2908 = vrot.lane.b32.xlu0 %v4597_v24, %s4483_s8 }
 0x79d   :  { %2997 = vrot.lane.b32.xlu0 %v4606_v28, %s4483_s8 }
 0x7ac   :  { %v2264_v62 = vpop.xlane.xlu1 %2263 }
 0x7ad   :  { %v2274_v63 = vsub.f32 %v5078_v1, %v2264_v62  ;;  %v2913_v1 = vpop.permute.xlu0 %2912  ;;  %v3821_v62 = vld [vmem:[%s5397_s3 + $0x38] sm:$0xff] }
 0x7af   :  { %v2288_v2 = vmul.f32 1.442695, %v2274_v63 }
 0x7b0   :  { %v5145_v9 = vpop.permute.xlu1 %2815 }
 0x7b1   :  { %4374 = vpow2.f32 %v2288_v2  ;;  %v3820_v2 = vld [vmem:[%s5397_s3 + $0x30] sm:$0xff]  ;;  %s4484_s3 = smov 40  }
 0x7b4   :  { %v2297_v10 = vpop.xlane.xlu0 %2296 }
 0x7b5   :  { %4376 = vrcp.f32 %v2297_v10 }
 0x7be   :  { %v5133_v4 = vpop.eup %4374 }
 0x7bf   :  { %v2310_v5 = vsel %vm572_vm2, %v5133_v4, 0.0 }
 0x7c0   :  { %2311 = vadd.xlane.f32.xlu1 %v2310_v5 }
 0x7c2   :  { %v4377_v25 = vpop.eup %4376 }
 0x7c3   :  { %v2325_v31 = vmul.f32 %v4377_v25, %v5082_v3 }
 0x7d1   :  { %2906 = vrot.lane.b32.xlu1 %v4591_v22, %s4483_s8 }
 0x7d5   :  { %3001 = vrot.lane.b32.xlu1 %v4606_v28, %s4482_s30 }
 0x7d9   :  { %2999 = vrot.lane.b32.xlu1 %v4603_v26, %s4483_s8 }
 0x7e1   :  { %v2294_v11 = vpop.xlane.xlu1 %2293 }
 0x7e2   :  { %4378 = vrcp.f32 %v2294_v11 }
 0x7e8   :  { %v2309_v18 = vpop.xlane.xlu0 %2308 }
 0x7e9   :  { %4380 = vrcp.f32 %v2309_v18 }
 0x7ec   :  { %v2306_v19 = vpop.xlane.xlu0 %2305 }
 0x7ed   :  { %4382 = vrcp.f32 %v2306_v19 }
 0x7ef   :  { %v4379_v29 = vpop.eup %4378 }
 0x7f0   :  { %v2324_v30 = vmul.f32 %v4379_v29, %v5090_v21 }
 0x7f2   :  { %4171 = vmatprep.mubr.msk.f32.mxu0 %vm572_vm2, %v2324_v30 }
 0x7f3   :  { %4172 = vmatmul.mubr.msk.f32.vlgmr.msra.gmra.mxu0 %vm572_vm2, %v2325_v31 }
 0x7f4   :  { %4182 = vmatpush3.msra.mxu0 %v2509_v49 }
 0x7f5   :  { %4183 = vmatprep.subr.mxu0 %v2507_v59 }
 0x7f6   :  { %4184 = vmatpush3.msra.mxu0 %v2507_v59  ;;  %v4381_v34 = vpop.eup %4380 }
 0x7f7   :  { %4195 = vmatprep.subr.msk.mxu0 %vm213_vm1, %v2731_v40  ;;  %v2329_v37 = vmul.f32 %v4381_v34, %v5094_v27 }
 0x7fa   :  { %v4383_v35 = vpop.eup %4382 }
 0x7fb   :  { %v2328_v32 = vmul.f32 %v4383_v35, %v5099_v33 }
 0x7fc   :  { %v2303_v36 = vpop.xlane.xlu1 %2302 }
 0x7fd   :  { %4185 = vmatprep.mubr.msk.f32.mxu0 %vm572_vm2, %v2328_v32  ;;  %4384 = vrcp.f32 %v2303_v36 }
 0x7fe   :  { %4186 = vmatmul.mubr.msk.f32.vlgmr.msra.gmra.mxu0 %vm572_vm2, %v2329_v37 }
 0x7ff   :  { %4196 = vmatpush3.xpose.msk.msra.mxu0 %vm213_vm1, %v2731_v40  ;;  %4199 = vmatprep.mubr.msk.f32.mxu0 %vm213_vm1, %v2725_v60 }
 0x800   :  { %v2300_v3 = vpop.xlane.xlu1 %2299  ;;  %4197 = vmatprep.subr.msk.mxu0 %vm213_vm1, %v2729_v53 }
 0x801   :  { %4386 = vrcp.f32 %v2300_v3 }
 0x803   :  { %4198 = vmatpush3.xpose.msk.msra.mxu0 %vm213_vm1, %v2729_v53 }
 0x804   :  { %4209 = vmatprep.subr.msk.mxu0 %vm213_vm1, %v2913_v1  ;;  %v2911_v21 = vpop.permute.xlu1 %2910  ;;  %v2315_v41 = vpop.xlane.xlu0 %2314 }
 0x805   :  { %4388 = vrcp.f32 %v2315_v41 }
 0x806   :  { %4200 = vmatmul.mubr.msk.f32.vlgmr.msra.gmra.mxu0 %vm213_vm1, %v2727_v8 }
 0x807   :  { %4210 = vmatpush3.xpose.msk.msra.mxu0 %vm213_vm1, %v2913_v1 }
 0x808   :  { %4211 = vmatprep.subr.msk.mxu0 %vm213_vm1, %v2911_v21  ;;  %v2818_v43 = vpop.permute.xlu0 %2817 }
 0x80a   :  { %v4385_v27 = vpop.eup %4384 }
 0x80b   :  { %4212 = vmatpush3.xpose.msk.msra.mxu0 %vm213_vm1, %v2911_v21  ;;  %v2327_v39 = vmul.f32 %v4385_v27, %v5105_v51 }
 0x80c   :  { %v3004_v48 = vpop.permute.xlu0 %3003 }
 0x80e   :  { %v4387_v33 = vpop.eup %4386 }
 0x80f   :  { %v2326_v38 = vmul.f32 %v4387_v33, %v5109_v54 }
 0x810   :  { %v2909_v52 = vpop.permute.xlu0 %2908 }
 0x811   :  { %4178 = vmatprep.mubr.msk.f32.mxu1 %vm572_vm2, %v2326_v38 }
 0x812   :  { %4179 = vmatmul.mubr.msk.f32.vlgmr.msra.gmra.mxu1 %vm572_vm2, %v2327_v39  ;;  %v4389_v51 = vpop.eup %4388 }
 0x813   :  { %4189 = vmatpush3.msra.mxu1 %v5111_v55  ;;  %v2331_v57 = vmul.f32 %v4389_v51, %v5116_v44 }
 0x814   :  { %4190 = vmatprep.subr.mxu1 %v2594_v6  ;;  %v2998_v56 = vpop.permute.xlu0 %2997 }
 0x815   :  { %4191 = vmatpush3.msra.mxu1 %v2594_v6 }
 0x816   :  { %4202 = vmatprep.subr.msk.mxu1 %vm213_vm1, %v5137_v7 }
 0x849   :  { %v2312_v49 = vpop.xlane.xlu1 %2311 }
 0x84a   :  { %4390 = vrcp.f32 %v2312_v49 }
 0x84d   :  { %v2907_v50 = vpop.permute.xlu1 %2906 }
 0x84e   :  { %4213 = vmatprep.mubr.msk.f32.mxu0 %vm213_vm1, %v2907_v50 }
 0x84f   :  { %4214 = vmatmul.mubr.msk.f32.vlgmr.msra.gmra.mxu0 %vm213_vm1, %v2909_v52 }
 0x851   :  { %v3002_v44 = vpop.permute.xlu1 %3001 }
 0x855   :  { %v3000_v59 = vpop.permute.xlu1 %2999 }
 0x857   :  { %v4391_v54 = vpop.eup %4390 }
 0x858   :  { %v2330_v55 = vmul.f32 %v4391_v54, %v5133_v4 }
 0x85a   :  { %4192 = vmatprep.mubr.msk.f32.mxu1 %vm572_vm2, %v2330_v55 }
 0x85b   :  { %4193 = vmatmul.mubr.msk.f32.vlgmr.msra.gmra.mxu1 %vm572_vm2, %v2331_v57 }
 0x85c   :  { %4203 = vmatpush3.xpose.msk.msra.mxu1 %vm213_vm1, %v5137_v7  ;;  %4206 = vmatprep.mubr.msk.f32.mxu1 %vm213_vm1, %v5145_v9 }
 0x85d   :  { %4204 = vmatprep.subr.msk.mxu1 %vm213_vm1, %v5130_v61 }
 0x860   :  { %4205 = vmatpush3.xpose.msk.msra.mxu1 %vm213_vm1, %v5130_v61 }
 0x861   :  { %4216 = vmatprep.subr.msk.mxu1 %vm213_vm1, %v3004_v48 }
 0x863   :  { %4207 = vmatmul.mubr.msk.f32.vlgmr.msra.gmra.mxu1 %vm213_vm1, %v2818_v43 }
 0x864   :  { %4217 = vmatpush3.xpose.msk.msra.mxu1 %vm213_vm1, %v3004_v48  ;;  %4220 = vmatprep.mubr.msk.f32.mxu1 %vm213_vm1, %v2998_v56 }
 0x865   :  { %4218 = vmatprep.subr.msk.mxu1 %vm213_vm1, %v3002_v44 }
 0x868   :  { %4219 = vmatpush3.xpose.msk.msra.mxu1 %vm213_vm1, %v3002_v44 }
 0x86b   :  { %4221 = vmatmul.mubr.msk.f32.vlgmr.msra.gmra.mxu1 %vm213_vm1, %v3000_v59 }
 0x8b3   :  { %v5193_v40 = vpop.f32.mrf.mxu0 }
 0x8b5   :  { %v5195_v53 = vpop.f32.mrf.mxu0 }
 0x8be   :  { %v5197_v60 = vpop.f32.mrf.mxu0 }
 0x8c0   :  { %v5199_v61 = vpop.f32.mrf.mxu0 }
 0x8c6   :  { %v4201_v63 = vpop.f32.mrf.mxu0 }
 0x8c7   :  { %v2812_v4 = vadd.f32 %v4201_v63, %v3821_v62 }
 0x8c8   :  { %v2806_v5 = vpop.f32.mrf.mxu0 }
 0x8c9   :  { %v3089_v6 = vadd.f32 %v5040_v58, %v2812_v4  ;;  %v2807_v7 = vadd.f32 %v3820_v2, %v2806_v5 }
 0x8cb   :  { %v3088_v8 = vadd.f32 %v5075_v0, %v2807_v7  ;;  %v3099_v1 = vsel %vm572_vm2, %v3089_v6, -inf }
 0x8cc   :  { %3100 = vmax.xlane.f32.xlu1 %v3099_v1 }
 0x8cd   :  { %v3096_v9 = vsel %vm572_vm2, %v3088_v8, -inf }
 0x8ce   :  { %3097 = vmax.xlane.f32.xlu0 %v3096_v9 }
 0x8d2   :  { %v5213_v29 = vpop.f32.mrf.mxu1 }
 0x8d4   :  { %v5215_v30 = vpop.f32.mrf.mxu1 }
 0x90f   :  { %v4215_v10 = vpop.f32.mrf.mxu0 }
 0x910   :  { %v2994_v21 = vadd.f32 %v4215_v10, %v3821_v62 }
 0x911   :  { %v2988_v11 = vpop.f32.mrf.mxu0 }
 0x912   :  { %v2989_v18 = vadd.f32 %v3820_v2, %v2988_v11  ;;  %v3093_v41 = vadd.f32 %v5040_v58, %v2994_v21 }
 0x914   :  { %v3092_v19 = vadd.f32 %v5075_v0, %v2989_v18  ;;  %v3111_v51 = vsel %vm572_vm2, %v3093_v41, -inf }
 0x916   :  { %v3108_v25 = vsel %vm572_vm2, %v3092_v19, -inf }
 0x917   :  { %3109 = vmax.xlane.f32.xlu1 %v3108_v25 }
 0x91b   :  { %v5217_v31 = vpop.f32.mrf.mxu1 }
 0x91d   :  { %v5219_v34 = vpop.f32.mrf.mxu1 }
 0x923   :  { %v4208_v35 = vpop.f32.mrf.mxu1 }
 0x924   :  { %v2903_v36 = vadd.f32 %v4208_v35, %v3821_v62 }
 0x925   :  { %v2897_v32 = vpop.f32.mrf.mxu1 }
 0x926   :  { %v2898_v37 = vadd.f32 %v3820_v2, %v2897_v32  ;;  %v3091_v27 = vadd.f32 %v5040_v58, %v2903_v36 }
 0x928   :  { %v3090_v3 = vadd.f32 %v5075_v0, %v2898_v37  ;;  %v3105_v49 = vsel %vm572_vm2, %v3091_v27, -inf }
 0x92a   :  { %v3102_v33 = vsel %vm572_vm2, %v3090_v3, -inf }
 0x92b   :  { %3103 = vmax.xlane.f32.xlu0 %v3102_v33  ;;  %v4222_v38 = vpop.f32.mrf.mxu1 }
 0x92c   :  { %v3085_v43 = vadd.f32 %v4222_v38, %v3821_v62 }
 0x92d   :  { %v3079_v39 = vpop.f32.mrf.mxu1 }
 0x92e   :  { %v3080_v48 = vadd.f32 %v3820_v2, %v3079_v39  ;;  %v3095_v52 = vadd.f32 %v5040_v58, %v3085_v43 }
 0x92f   :  { %3106 = vmax.xlane.f32.xlu0 %v3105_v49 }
 0x930   :  { %v3094_v50 = vadd.f32 %v5075_v0, %v3080_v48  ;;  %v3117_v55 = vsel %vm572_vm2, %v3095_v52, -inf }
 0x932   :  { %v3114_v54 = vsel %vm572_vm2, %v3094_v50, -inf }
 0x933   :  { %3112 = vmax.xlane.f32.xlu0 %v3111_v51  ;;  %3115 = vmax.xlane.f32.xlu1 %v3114_v54 }
 0x937   :  { %3118 = vmax.xlane.f32.xlu0 %v3117_v55 }
 0x944   :  { %3186 = vrot.lane.b32.xlu1 %v4582_v14, %s4484_s3 }
 0x948   :  { %3273 = vrot.lane.b32.xlu1 %v4587_v20, %s4484_s3 }
 0x94c   :  { %3271 = vrot.lane.b32.xlu1 %v4595_v23, %s4484_s3 }
 0x94d   :  { %3184 = vrot.lane.b32.xlu0 %v4584_v17, %s4484_s3 }
 0x950   :  { %3358 = vrot.lane.b32.xlu1 %v4591_v22, %s4484_s3 }
 0x951   :  { %3360 = vrot.lane.b32.xlu0 %v4597_v24, %s4484_s3 }
 0x955   :  { %v3101_v58 = vpop.xlane.xlu1 %3100 }
 0x956   :  { %v3121_v0 = vsub.f32 %v3089_v6, %v3101_v58 }
 0x957   :  { %v3098_v57 = vpop.xlane.xlu0 %3097 }
 0x958   :  { %v3130_v56 = vmul.f32 1.442695, %v3121_v0  ;;  %v3120_v14 = vsub.f32 %v3088_v8, %v3098_v57 }
 0x95a   :  { %4392 = vpow2.f32 %v3130_v56  ;;  %v3128_v44 = vmul.f32 1.442695, %v3120_v14 }
 0x95c   :  { %4394 = vpow2.f32 %v3128_v44 }
 0x967   :  { %v5243_v20 = vpop.eup %4392 }
 0x968   :  { %v3147_v23 = vsel %vm572_vm2, %v5243_v20, 0.0 }
 0x969   :  { %v5247_v17 = vpop.eup %4394 }
 0x96a   :  { %v3144_v22 = vsel %vm572_vm2, %v5247_v17, 0.0 }
 0x970   :  { %3148 = vadd.xlane.f32.xlu0 %v3147_v23 }
 0x974   :  { %3145 = vadd.xlane.f32.xlu1 %v3144_v22 }
 0x9a0   :  { %v3110_v24 = vpop.xlane.xlu1 %3109 }
 0x9a1   :  { %v3124_v59 = vsub.f32 %v3092_v19, %v3110_v24 }
 0x9a3   :  { %v3136_v62 = vmul.f32 1.442695, %v3124_v59 }
 0x9a5   :  { %4396 = vpow2.f32 %v3136_v62 }
 0x9b2   :  { %v5251_v63 = vpop.eup %4396 }
 0x9b3   :  { %v3156_v2 = vsel %vm572_vm2, %v5251_v63, 0.0 }
 0x9b4   :  { %v3104_v4 = vpop.xlane.xlu0 %3103  ;;  %3157 = vadd.xlane.f32.xlu1 %v3156_v2 }
 0x9b5   :  { %v3122_v5 = vsub.f32 %v3090_v3, %v3104_v4 }
 0x9b7   :  { %v3132_v6 = vmul.f32 1.442695, %v3122_v5 }
 0x9b8   :  { %v3107_v7 = vpop.xlane.xlu0 %3106 }
 0x9b9   :  { %4398 = vpow2.f32 %v3132_v6  ;;  %v3123_v8 = vsub.f32 %v3091_v27, %v3107_v7 }
 0x9bb   :  { %v3134_v25 = vmul.f32 1.442695, %v3123_v8 }
 0x9bc   :  { %v3116_v1 = vpop.xlane.xlu1 %3115  ;;  %v3113_v9 = vpop.xlane.xlu0 %3112 }
 0x9bd   :  { %v3126_v10 = vsub.f32 %v3094_v50, %v3116_v1  ;;  %v3125_v11 = vsub.f32 %v3093_v41, %v3113_v9 }
 0x9bf   :  { %v3140_v18 = vmul.f32 1.442695, %v3126_v10  ;;  %v3138_v19 = vmul.f32 1.442695, %v3125_v11 }
 0x9c0   :  { %v3187_v35 = vpop.permute.xlu1 %3186  ;;  %v3119_v32 = vpop.xlane.xlu0 %3118 }
 0x9c1   :  { %4400 = vpow2.f32 %v3140_v18  ;;  %v3127_v36 = vsub.f32 %v3095_v52, %v3119_v32  ;;  %4223 = vmatprep.subr.mxu0 %v3187_v35  ;;  %v3584_v18 = vld [vmem:[#allocation5 + $0x18] sm:$0xff] }
 0x9c2   :  { %4402 = vpow2.f32 %v3138_v19  ;;  %4224 = vmatpush3.msra.mxu0 %v3187_v35  ;;  %v3583_v19 = vld [vmem:[#allocation5 + $0x10] sm:$0xff]  ;;  %v3581_v35 = vld [vmem:[#allocation5] sm:$0xff] }
 0x9c3   :  { %4404 = vpow2.f32 %v3134_v25  ;;  %v3142_v37 = vmul.f32 1.442695, %v3127_v36  ;;  %v3582_v25 = vld [vmem:[#allocation5 + $0x8] sm:$0xff] }
 0x9c4   :  { %v3274_v3 = vpop.permute.xlu1 %3273  ;;  %v3185_v21 = vpop.permute.xlu0 %3184 }
 0x9c5   :  { %4225 = vmatprep.subr.mxu0 %v3185_v21  ;;  %4230 = vmatprep.subr.mxu1 %v3274_v3  ;;  %4406 = vpow2.f32 %v3142_v37 }
 0x9c6   :  { %v5255_v27 = vpop.eup %4398  ;;  %4226 = vmatpush3.msra.mxu0 %v3185_v21  ;;  %4231 = vmatpush3.msra.mxu1 %v3274_v3 }
 0x9c7   :  { %v3150_v33 = vsel %vm572_vm2, %v5255_v27, 0.0 }
 0x9c8   :  { %v3272_v38 = vpop.permute.xlu1 %3271  ;;  %3151 = vadd.xlane.f32.xlu1 %v3150_v33  ;;  %v3361_v39 = vpop.permute.xlu0 %3360 }
 0x9c9   :  { %4232 = vmatprep.subr.mxu1 %v3272_v38  ;;  %4237 = vmatprep.subr.mxu0 %v3361_v39 }
 0x9ca   :  { %4233 = vmatpush3.msra.mxu1 %v3272_v38 }
 0x9ce   :  { %v5259_v41 = vpop.eup %4400 }
 0x9cf   :  { %v5261_v43 = vpop.eup %4402  ;;  %v3162_v48 = vsel %vm572_vm2, %v5259_v41, 0.0 }
 0x9d0   :  { %3163 = vadd.xlane.f32.xlu1 %v3162_v48  ;;  %v3159_v49 = vsel %vm572_vm2, %v5261_v43, 0.0  ;;  %v5267_v50 = vpop.eup %4404 }
 0x9d1   :  { %3160 = vadd.xlane.f32.xlu0 %v3159_v49  ;;  %v3153_v52 = vsel %vm572_vm2, %v5267_v50, 0.0 }
 0x9d2   :  { %v5271_v51 = vpop.eup %4406 }
 0x9d3   :  { %v3165_v54 = vsel %vm572_vm2, %v5271_v51, 0.0 }
 0x9d5   :  { %3154 = vadd.xlane.f32.xlu0 %v3153_v52 }
 0x9d9   :  { %3166 = vadd.xlane.f32.xlu0 %v3165_v54 }
 0x9e1   :  { %3445 = vrot.lane.b32.xlu1 %v4606_v28, %s4484_s3  ;;  %v3359_v28 = vpop.permute.xlu1 %3358 }
 0x9e5   :  { %1838 = vrot.lane.b32.xlu1 %v4994_v12, %s4472_s28 }
 0x9e9   :  { %2690 = vrot.lane.b32.xlu1 %v5193_v40, %s4485_s4 }
 0x9ed   :  { %1842 = vrot.lane.b32.xlu1 %v5020_v42, %s4472_s28 }
 0x9ef   :  { %3447 = vrot.lane.b32.xlu0 %v4603_v26, %s4484_s3 }
 0x9f1   :  { %2694 = vrot.lane.b32.xlu1 %v5213_v29, %s4485_s4 }
 0x9f3   :  { %1836 = vrot.lane.b32.xlu0 %v4996_v13, %s4472_s28 }
 0x9f5   :  { %1846 = vrot.lane.b32.xlu1 %v4998_v15, %s4472_s28 }
 0x9f7   :  { %2688 = vrot.lane.b32.xlu0 %v5195_v53, %s4485_s4 }
 0x9f9   :  { %2698 = vrot.lane.b32.xlu1 %v5197_v60, %s4485_s4  ;;  %v3149_v12 = vpop.xlane.xlu0 %3148 }
 0x9fa   :  { %4408 = vrcp.f32 %v3149_v12 }
 0x9fb   :  { %1840 = vrot.lane.b32.xlu0 %v5024_v45, %s4472_s28 }
 0x9fd   :  { %v3146_v26 = vpop.xlane.xlu1 %3145  ;;  %1850 = vrot.lane.b32.xlu1 %v5026_v46, %s4472_s28 }
 0x9fe   :  { %4410 = vrcp.f32 %v3146_v26 }
 0x9ff   :  { %2692 = vrot.lane.b32.xlu0 %v5215_v30, %s4485_s4 }
 0xa03   :  { %1844 = vrot.lane.b32.xlu0 %v5000_v16, %s4472_s28 }
 0xa07   :  { %2696 = vrot.lane.b32.xlu0 %v5199_v61, %s4485_s4  ;;  %v4409_v13 = vpop.eup %4408 }
 0xa08   :  { %v3177_v45 = vmul.f32 %v4409_v13, %v5243_v20 }
 0xa0b   :  { %v4411_v15 = vpop.eup %4410  ;;  %1848 = vrot.lane.b32.xlu0 %v5028_v47, %s4472_s28  ;;  %s4486_s28 = smov 24  }
 0xa0c   :  { %v3176_v42 = vmul.f32 %v4411_v15, %v5247_v17 }
 0xa0e   :  { %4227 = vmatprep.mubr.msk.f32.mxu0 %vm572_vm2, %v3176_v42 }
 0xa0f   :  { %4228 = vmatmul.mubr.msk.f32.vlgmr.msra.gmra.mxu0 %vm572_vm2, %v3177_v45 }
 0xa10   :  { %4238 = vmatpush3.msra.mxu0 %v3361_v39 }
 0xa11   :  { %4239 = vmatprep.subr.mxu0 %v3359_v28 }
 0xa12   :  { %4240 = vmatpush3.msra.mxu0 %v3359_v28 }
 0xa13   :  { %4251 = vmatprep.subr.mxu0 %v3584_v18 }
 0xa3d   :  { %v3158_v16 = vpop.xlane.xlu1 %3157 }
 0xa3e   :  { %4412 = vrcp.f32 %v3158_v16  ;;  %v3846_v16 = vld [vmem:[%s5400_s6] ss:$0 sm:$0xff] }
 0xa4b   :  { %v4413_v46 = vpop.eup %4412 }
 0xa4c   :  { %v3180_v40 = vmul.f32 %v4413_v46, %v5251_v63 }
 0xa4e   :  { %4241 = vmatprep.mubr.msk.f32.mxu0 %vm572_vm2, %v3180_v40 }
 0xa51   :  { %v3152_v53 = vpop.xlane.xlu1 %3151 }
 0xa52   :  { %4414 = vrcp.f32 %v3152_v53 }
 0xa59   :  { %v3164_v47 = vpop.xlane.xlu1 %3163 }
 0xa5a   :  { %v3161_v60 = vpop.xlane.xlu0 %3160 }
 0xa5b   :  { %4416 = vrcp.f32 %v3161_v60 }
 0xa5c   :  { %4418 = vrcp.f32 %v3164_v47 }
 0xa5d   :  { %v3446_v61 = vpop.permute.xlu1 %3445 }
 0xa5e   :  { %v3155_v29 = vpop.xlane.xlu0 %3154 }
 0xa5f   :  { %v4415_v30 = vpop.eup %4414  ;;  %4420 = vrcp.f32 %v3155_v29 }
 0xa60   :  { %v3178_v55 = vmul.f32 %v4415_v30, %v5255_v27 }
 0xa61   :  { %v1839_v58 = vpop.permute.xlu1 %1838 }
 0xa62   :  { %1862 = vst.msk [vmem:[#allocation2 + $0x8] sm:$0xff] %vm1860_vm3, %v1839_v58  ;;  %v3167_v0 = vpop.xlane.xlu0 %3166  ;;  %4234 = vmatprep.mubr.msk.f32.mxu1 %vm572_vm2, %v3178_v55 }
 0xa63   :  { %4422 = vrcp.f32 %v3167_v0 }
 0xa65   :  { %v2691_v57 = vpop.permute.xlu1 %2690 }
 0xa66   :  { %2714 = vst.msk [vmem:[#allocation2 + $0x8] sm:$0xff] %vm2712_vm4, %v2691_v57  ;;  %v3448_v56 = vpop.permute.xlu0 %3447 }
 0xa67   :  { %4244 = vmatprep.subr.mxu1 %v3448_v56 }
 0xa68   :  { %v4417_v14 = vpop.eup %4416 }
 0xa69   :  { %v1843_v44 = vpop.permute.xlu1 %1842  ;;  %v3181_v20 = vmul.f32 %v4417_v14, %v5261_v43  ;;  %v4419_v17 = vpop.eup %4418 }
 0xa6a   :  { %1864 = vst.msk [vmem:[#allocation2 + $0x18] sm:$0xff] %vm1860_vm3, %v1843_v44  ;;  %v1837_v23 = vpop.permute.xlu0 %1836  ;;  %v3182_v63 = vmul.f32 %v4419_v17, %v5259_v41 }
 0xa6b   :  { %1861 = vst.msk [vmem:[#allocation2] sm:$0xff] %vm1860_vm3, %v1837_v23  ;;  %4242 = vmatmul.mubr.msk.f32.vlgmr.msra.gmra.mxu0 %vm572_vm2, %v3181_v20 }
 0xa6c   :  { %v4421_v22 = vpop.eup %4420  ;;  %4252 = vmatpush3.msra.mxu0 %v3584_v18 }
 0xa6d   :  { %v2695_v24 = vpop.permute.xlu1 %2694  ;;  %v3179_v59 = vmul.f32 %v4421_v22, %v5267_v50  ;;  %4253 = vmatprep.subr.mxu0 %v3583_v19 }
 0xa6e   :  { %2716 = vst.msk [vmem:[#allocation2 + $0x18] sm:$0xff] %vm2712_vm4, %v2695_v24  ;;  %v2689_v62 = vpop.permute.xlu0 %2688  ;;  %4254 = vmatpush3.msra.mxu0 %v3583_v19 }
 0xa6f   :  { %2713 = vst.msk [vmem:[#allocation2] sm:$0xff] %vm2712_vm4, %v2689_v62  ;;  %4235 = vmatmul.mubr.msk.f32.vlgmr.msra.gmra.mxu1 %vm572_vm2, %v3179_v59  ;;  %4255 = vmatprep.subr.mxu0 %v3582_v25 }
 0xa70   :  { %v4423_v2 = vpop.eup %4422  ;;  %4245 = vmatpush3.msra.mxu1 %v3448_v56  ;;  %4248 = vmatprep.mubr.msk.f32.mxu1 %vm572_vm2, %v3182_v63 }
 0xa71   :  { %4246 = vmatprep.subr.mxu1 %v3446_v61  ;;  %v1847_v4 = vpop.permute.xlu1 %1846  ;;  %v3183_v5 = vmul.f32 %v4423_v2, %v5271_v51  ;;  %4256 = vmatpush3.msra.mxu0 %v3582_v25 }
 0xa72   :  { %4247 = vmatpush3.msra.mxu1 %v3446_v61  ;;  %1866 = vst.msk [vmem:[#allocation2 + $0x28] sm:$0xff] %vm1860_vm3, %v1847_v4  ;;  %v1841_v6 = vpop.permute.xlu0 %1840  ;;  %4257 = vmatprep.subr.mxu0 %v3581_v35 }
 0xa73   :  { %1863 = vst.msk [vmem:[#allocation2 + $0x10] sm:$0xff] %vm1860_vm3, %v1841_v6  ;;  %4249 = vmatmul.mubr.msk.f32.vlgmr.msra.gmra.mxu1 %vm572_vm2, %v3183_v5  ;;  %4258 = vmatpush3.msra.mxu0 %v3581_v35 }
 0xa75   :  { %v2699_v7 = vpop.permute.xlu1 %2698 }
 0xa76   :  { %2718 = vst.msk [vmem:[#allocation2 + $0x28] sm:$0xff] %vm2712_vm4, %v2699_v7  ;;  %v2693_v8 = vpop.permute.xlu0 %2692 }
 0xa77   :  { %2715 = vst.msk [vmem:[#allocation2 + $0x10] sm:$0xff] %vm2712_vm4, %v2693_v8 }
 0xa79   :  { %v1851_v1 = vpop.permute.xlu1 %1850 }
 0xa7a   :  { %1868 = vst.msk [vmem:[#allocation2 + $0x38] sm:$0xff] %vm1860_vm3, %v1851_v1  ;;  %v1845_v9 = vpop.permute.xlu0 %1844 }
 0xa7b   :  { %1865 = vst.msk [vmem:[#allocation2 + $0x20] sm:$0xff] %vm1860_vm3, %v1845_v9 }
 0xa7e   :  { %v2697_v10 = vpop.permute.xlu0 %2696 }
 0xa7f   :  { %2717 = vst.msk [vmem:[#allocation2 + $0x20] sm:$0xff] %vm2712_vm4, %v2697_v10 }
 0xa82   :  { %v1849_v11 = vpop.permute.xlu0 %1848 }
 0xa83   :  { %1867 = vst.msk [vmem:[#allocation2 + $0x30] sm:$0xff] %vm1860_vm3, %v1849_v11 }
 0xacf   :  { %v4229_v32 = vpop.f32.mrf.mxu0 }
 0xad0   :  { %3542 = vrot.lane.b32.xlu1 %v4229_v32, %s4486_s28 }
 0xad1   :  { %v3262_v36 = vpop.f32.mrf.mxu0 }
 0xad2   :  { %3540 = vrot.lane.b32.xlu0 %v3262_v36, %s4486_s28 }
 0xb2b   :  { %v4243_v37 = vpop.f32.mrf.mxu0 }
 0xb2c   :  { %3550 = vrot.lane.b32.xlu1 %v4243_v37, %s4486_s28 }
 0xb2d   :  { %v3436_v3 = vpop.f32.mrf.mxu0 }
 0xb2e   :  { %3548 = vrot.lane.b32.xlu0 %v3436_v3, %s4486_s28 }
 0xb2f   :  { %v4236_v21 = vpop.f32.mrf.mxu1 }
 0xb30   :  { %3546 = vrot.lane.b32.xlu1 %v4236_v21, %s4486_s28 }
 0xb31   :  { %v3349_v27 = vpop.f32.mrf.mxu1 }
 0xb32   :  { %3544 = vrot.lane.b32.xlu0 %v3349_v27, %s4486_s28 }
 0xb33   :  { %v4250_v33 = vpop.f32.mrf.mxu1 }
 0xb34   :  { %2702 = vrot.lane.b32.xlu1 %v5217_v31, %s4485_s4 }
 0xb35   :  { %v3523_v38 = vpop.f32.mrf.mxu1 }
 0xb36   :  { %2700 = vrot.lane.b32.xlu0 %v5219_v34, %s4485_s4 }
 0xb38   :  { %3554 = vrot.lane.b32.xlu1 %v4250_v33, %s4486_s28 }
 0xb3a   :  { %3552 = vrot.lane.b32.xlu0 %v3523_v38, %s4486_s28 }
 0xb42   :  { %v3543_v39 = vpop.permute.xlu1 %3542 }
 0xb43   :  { %3566 = vst.msk [vmem:[#allocation2 + $0x8] sm:$0xff] %vm3564_vm5, %v3543_v39 }
 0xb44   :  { %v3541_v41 = vpop.permute.xlu0 %3540 }
 0xb45   :  { %3565 = vst.msk [vmem:[#allocation2] sm:$0xff] %vm3564_vm5, %v3541_v41 }
 0xb4a   :  { %v3574_v48 = vld [vmem:[#allocation2 + $0x8] sm:$0xff] }
 0xb4c   :  { %v3573_v43 = vld [vmem:[#allocation2] sm:$0xff] }
 0xb4d   :  { %4259 = vmatprep.mubr.msk.f32.mxu0 %vm73_vm0, %v3573_v43 }
 0xb4e   :  { %4260 = vmatmul.mubr.msk.f32.vlgmr.msra.gmra.mxu0 %vm73_vm0, %v3574_v48 }
 0xb9e   :  { %v3551_v31 = vpop.permute.xlu1 %3550 }
 0xb9f   :  { %3570 = vst.msk [vmem:[#allocation2 + $0x28] sm:$0xff] %vm3564_vm5, %v3551_v31 }
 0xba0   :  { %v3549_v34 = vpop.permute.xlu0 %3548 }
 0xba1   :  { %3569 = vst.msk [vmem:[#allocation2 + $0x20] sm:$0xff] %vm3564_vm5, %v3549_v34 }
 0xba2   :  { %v3547_v49 = vpop.permute.xlu1 %3546 }
 0xba3   :  { %3568 = vst.msk [vmem:[#allocation2 + $0x18] sm:$0xff] %vm3564_vm5, %v3547_v49 }
 0xba4   :  { %v3545_v50 = vpop.permute.xlu0 %3544 }
 0xba5   :  { %3567 = vst.msk [vmem:[#allocation2 + $0x10] sm:$0xff] %vm3564_vm5, %v3545_v50 }
 0xba6   :  { %v2703_v52 = vpop.permute.xlu1 %2702  ;;  %v3578_v15 = vld [vmem:[#allocation2 + $0x28] sm:$0xff] }
 0xba7   :  { %2720 = vst.msk [vmem:[#allocation2 + $0x38] sm:$0xff] %vm2712_vm4, %v2703_v52 }
 0xba8   :  { %v2701_v51 = vpop.permute.xlu0 %2700  ;;  %v3577_v13 = vld [vmem:[#allocation2 + $0x20] sm:$0xff] }
 0xba9   :  { %2719 = vst.msk [vmem:[#allocation2 + $0x30] sm:$0xff] %vm2712_vm4, %v2701_v51 }
 0xbaa   :  { %v3555_v54 = vpop.permute.xlu1 %3554  ;;  %v3576_v26 = vld [vmem:[#allocation2 + $0x18] sm:$0xff] }
 0xbab   :  { %3572 = vst.msk [vmem:[#allocation2 + $0x38] sm:$0xff] %vm3564_vm5, %v3555_v54 }
 0xbac   :  { %v3553_v28 = vpop.permute.xlu0 %3552  ;;  %v3575_v12 = vld [vmem:[#allocation2 + $0x10] sm:$0xff] }
 0xbad   :  { %3571 = vst.msk [vmem:[#allocation2 + $0x30] sm:$0xff] %vm3564_vm5, %v3553_v28  ;;  %4262 = vmatprep.mubr.msk.f32.mxu0 %vm73_vm0, %v3575_v12 }
 0xbae   :  { %4263 = vmatmul.mubr.msk.f32.gmra.mxu0 %vm73_vm0, %v3576_v26 }
 0xbaf   :  { %4265 = vmatprep.mubr.msk.f32.mxu0 %vm73_vm0, %v3577_v13 }
 0xbb2   :  { %4266 = vmatmul.mubr.msk.f32.gmra.mxu0 %vm73_vm0, %v3578_v15  ;;  %v3580_v45 = vld [vmem:[#allocation2 + $0x38] sm:$0xff] }
 0xbb4   :  { %v3579_v42 = vld [vmem:[#allocation2 + $0x30] sm:$0xff] }
 0xbb5   :  { %4268 = vmatprep.mubr.msk.f32.mxu0 %vm73_vm0, %v3579_v42 }
 0xbb6   :  { %4269 = vmatmul.mubr.msk.f32.gmra.mxu0 %vm73_vm0, %v3580_v45 }
 0xc0e   :  { %v4261_v46 = vpop.f32.mrf.mxu0 }
 0xc0f   :  { %v3688_v40 = vadd.f32 %v4261_v46, %v3846_v16 }
 0xc10   :  { %v3682_v53 = vpop.f32.mrf.mxu0 }
 0xc11   :  { %3722 = vst.msk [vmem:[%s5401_s7 + $0x8] sm:$0xff] %vm73_vm0, %v3688_v40  ;;  %v3683_v47 = vadd.f32 %v3846_v16, %v3682_v53 }
 0xc13   :  { %3721 = vst.msk [vmem:[%s5401_s7] sm:$0xff] %vm73_vm0, %v3683_v47 }
 0xc6e   :  { %v4264_v60 = vpop.f32.mrf.mxu0 }
 0xc6f   :  { %v3698_v61 = vadd.f32 %v4264_v60, %v3846_v16 }
 0xc70   :  { %v3692_v29 = vpop.f32.mrf.mxu0 }
 0xc71   :  { %3724 = vst.msk [vmem:[%s5401_s7 + $0x18] sm:$0xff] %vm73_vm0, %v3698_v61  ;;  %v3693_v30 = vadd.f32 %v3846_v16, %v3692_v29 }
 0xc72   :  { %v4267_v55 = vpop.f32.mrf.mxu0 }
 0xc73   :  { %3723 = vst.msk [vmem:[%s5401_s7 + $0x10] sm:$0xff] %vm73_vm0, %v3693_v30  ;;  %v3708_v58 = vadd.f32 %v4267_v55, %v3846_v16 }
 0xc74   :  { %v3702_v0 = vpop.f32.mrf.mxu0 }
 0xc75   :  { %3726 = vst.msk [vmem:[%s5401_s7 + $0x28] sm:$0xff] %vm73_vm0, %v3708_v58  ;;  %v3703_v57 = vadd.f32 %v3846_v16, %v3702_v0 }
 0xc76   :  { %v4270_v56 = vpop.f32.mrf.mxu0 }
 0xc77   :  { %3725 = vst.msk [vmem:[%s5401_s7 + $0x20] sm:$0xff] %vm73_vm0, %v3703_v57  ;;  %v3718_v14 = vadd.f32 %v4270_v56, %v3846_v16 }
 0xc78   :  { %v3712_v44 = vpop.f32.mrf.mxu0 }
 0xc79   :  { %3728 = vst.msk [vmem:[%s5401_s7 + $0x38] sm:$0xff] %vm73_vm0, %v3718_v14  ;;  %v3713_v20 = vadd.f32 %v3846_v16, %v3712_v44 }
 0xc7b   :  { %3727 = vst.msk [vmem:[%s5401_s7 + $0x30] sm:$0xff] %vm73_vm0, %v3713_v20 }
 0xc7c   :  { %3733 = vsyncpa [#allocation4], 1 }
 0xc7d   :  { %3734 = vsyncpa [#allocation6], 1 }

</bundles_post_ra>
